<compile_context>
chip_gen: v5e
topology: v5e:2x2
jax: 0.10.0
libtpu: 0.0.40
codegen_flags: <defaults>
</compile_context>

<pallas_src>
import math
import jax
import jax.numpy as jnp
from jax.experimental import pallas as pl
from jax.experimental.pallas import tpu as pltpu

# ----- problem sizes (small, consistent with the module) -----
B = 2          # batch
S = 8          # target sequence length
S_SRC = 8      # source (encoder) sequence length
D_MODEL = 32   # model width
H = 4          # heads
D_K = D_MODEL // H
D_FF = D_MODEL   # forced equal to d_model because linear_1 is applied twice
EPS = 1e-6

assert D_FF == D_MODEL, "reference module applies linear_1 twice -> d_ff must equal d_model"

# Packed-weight column layout: every group starts on a 128-lane boundary.
COL_QKV_S = 0 * 128   # fused [Wq | Wk | Wv] for self-attn   (width 3*D = 96)
COL_WO_S  = 1 * 128   # self-attn Wo                          (width D)
COL_WQ_C  = 2 * 128   # cross-attn Wq                         (width D)
COL_KV_C  = 3 * 128   # fused [Wk | Wv] for cross-attn        (width 2*D = 64)
COL_WO_C  = 4 * 128   # cross-attn Wo                         (width D)
COL_W1    = 5 * 128   # feed-forward W1 (applied twice)       (width D)
N_COLS    = 6 * 128   # (D_MODEL, 768) f32 slab = 96 KiB


# ---------------------------------------------------------------------------
# shared math: works both on Pallas Refs (inside the kernel) and on plain jnp
# arrays (pure-JAX reference).  `approx_recip=True` routes the softmax
# denominator to the EUP; layernorm always uses exact division.
# ---------------------------------------------------------------------------
def _block_math(xs, es, tbias, sbias, ln, W, bvec, *, approx_recip):
    D = D_MODEL
    if approx_recip:
        recip = lambda v: pl.reciprocal(v, approx=True)
    else:
        recip = lambda v: 1.0 / v

    def layernorm(v, alpha, bias):
        mean = jnp.mean(v, axis=-1, keepdims=True)
        var = jnp.sum((v - mean) ** 2, axis=-1, keepdims=True) * (1.0 / (D - 1))
        return alpha * (v - mean) / (jnp.sqrt(var) + EPS) + bias

    def matmul(a, wcols, bcols):
        return jnp.dot(a, wcols, preferred_element_type=jnp.float32) + bcols

    def attention(q2, k2, v2, neg_bias, skv, wo, bo):
        # q2: (bb*S, D), k2/v2: (bb*skv, D); neg_bias: (S, skv) additive mask.
        bb = q2.shape[0] // S
        q3 = q2.reshape(bb, S, D)
        k3 = k2.reshape(bb, skv, D)
        v3 = v2.reshape(bb, skv, D)
        nb = neg_bias[None, :, :]
        scale = 1.0 / math.sqrt(D_K)
        out = None
        for h in range(H):  # heads on the lane axis; static slices, unrolled at trace time
            lo = h * D_K
            qs = q3[:, :, lo:lo + D_K]
            ks = k3[:, :, lo:lo + D_K]
            vs = v3[:, :, lo:lo + D_K]
            s = jnp.einsum('bqd,bkd->bqk', qs, ks,
                           preferred_element_type=jnp.float32) * scale + nb
            s = s - jnp.max(s, axis=-1, keepdims=True)
            p = jnp.exp(s)
            p = p * recip(jnp.sum(p, axis=-1, keepdims=True))
            oh = jnp.einsum('bqk,bkd->bqd', p, vs,
                            preferred_element_type=jnp.float32)
            # fuse W_o: concat_h(o_h) @ Wo == sum_h o_h @ Wo[h*Dk:(h+1)*Dk, :]
            contrib = jnp.dot(oh.reshape(bb * S, D_K), wo[lo:lo + D_K, :],
                              preferred_element_type=jnp.float32)
            out = contrib if out is None else out + contrib
        return out + bo

    # residual 1: self attention (tgt mask)
    xn = layernorm(xs, ln[0], ln[1])
    qkv = matmul(xn, W[:, COL_QKV_S:COL_QKV_S + 3 * D],
                 bvec[:, COL_QKV_S:COL_QKV_S + 3 * D])           # fused QKV projection
    wo_s = W[:, COL_WO_S:COL_WO_S + D]
    bo_s = bvec[:, COL_WO_S:COL_WO_S + D]
    xs = xs + attention(qkv[:, 0:D], qkv[:, D:2 * D], qkv[:, 2 * D:3 * D],
                        tbias, S, wo_s, bo_s)

    # residual 2: cross attention against encoder output (src mask)
    xn = layernorm(xs, ln[2], ln[3])
    q = matmul(xn, W[:, COL_WQ_C:COL_WQ_C + D], bvec[:, COL_WQ_C:COL_WQ_C + D])
    kv = matmul(es, W[:, COL_KV_C:COL_KV_C + 2 * D],
                bvec[:, COL_KV_C:COL_KV_C + 2 * D])              # fused KV projection
    wo_c = W[:, COL_WO_C:COL_WO_C + D]
    bo_c = bvec[:, COL_WO_C:COL_WO_C + D]
    xs = xs + attention(q, kv[:, 0:D], kv[:, D:2 * D], sbias, S_SRC, wo_c, bo_c)

    # residual 3: feed-forward (linear_1 applied twice, relu in between)
    xn = layernorm(xs, ln[4], ln[5])
    w1 = W[:, COL_W1:COL_W1 + D]        # hoisted: reused twice, JAX doesn't CSE slices
    b1 = bvec[:, COL_W1:COL_W1 + D]
    hdn = jnp.maximum(jnp.dot(xn, w1, preferred_element_type=jnp.float32) + b1, 0.0)
    xs = xs + jnp.dot(hdn, w1, preferred_element_type=jnp.float32) + b1
    return xs


# ---------------------------------------------------------------------------
# Pallas kernel: one invocation processes the whole (B*S, D) slab.
# ---------------------------------------------------------------------------
def _decoder_kernel(ln_ref,               # SMEM f32[6]: (alpha, bias) x 3 residuals
                    x_ref, enc_ref,        # (B*S, D), (B*S_SRC, D)
                    tbias_ref, sbias_ref,  # additive mask biases (S, S), (S, S_SRC)
                    w_ref, b_ref,          # packed (D, 768), (1, 768)
                    out_ref):              # (B*S, D)
    out_ref[...] = _block_math(x_ref[...], enc_ref[...],
                               tbias_ref[...], sbias_ref[...],
                               ln_ref, w_ref, b_ref, approx_recip=True)


def decoder_block(x, enc, tgt_mask, src_mask, params):
    ln, W, bvec = params
    Bsz, Sq, D = x.shape
    S_src = enc.shape[1]

    # wrapper-side layout plumbing (free): fold batch into rows, build additive biases
    x2 = x.reshape(Bsz * Sq, D)
    enc2 = enc.reshape(Bsz * S_src, D)
    tbias = jnp.where(tgt_mask == 0.0, -1.0e9, 0.0).astype(jnp.float32)
    sbias = jnp.where(src_mask == 0.0, -1.0e9, 0.0).astype(jnp.float32)

    vmem = pltpu.MemorySpace.VMEM
    out2 = pl.pallas_call(
        _decoder_kernel,
        out_shape=jax.ShapeDtypeStruct((Bsz * Sq, D), jnp.float32),
        in_specs=[
            pl.BlockSpec(memory_space=pltpu.MemorySpace.SMEM),   # layernorm scalars
            pl.BlockSpec(memory_space=vmem),                     # x      (B*S, D)
            pl.BlockSpec(memory_space=vmem),                     # enc    (B*S_src, D)
            pl.BlockSpec(memory_space=vmem),                     # tgt additive bias
            pl.BlockSpec(memory_space=vmem),                     # src additive bias
            pl.BlockSpec(memory_space=vmem),                     # packed weights
            pl.BlockSpec(memory_space=vmem),                     # packed biases
        ],
        out_specs=pl.BlockSpec(memory_space=vmem),
    )(ln, x2, enc2, tbias, sbias, W, bvec)
    return out2.reshape(Bsz, Sq, D)


# ---------------------------------------------------------------------------
# deterministic parameter construction (128-lane-aligned packed slabs)
# ---------------------------------------------------------------------------
def make_params(key):
    keys = jax.random.split(key, 18)
    it = iter(keys)

    def lin():
        w = 0.05 * jax.random.normal(next(it), (D_MODEL, D_MODEL), jnp.float32)
        b = 0.05 * jax.random.normal(next(it), (1, D_MODEL), jnp.float32)
        return w, b

    wq_s, bq_s = lin(); wk_s, bk_s = lin(); wv_s, bv_s = lin(); wo_s, bo_s = lin()
    wq_c, bq_c = lin(); wk_c, bk_c = lin(); wv_c, bv_c = lin(); wo_c, bo_c = lin()
    w1, b1 = lin()

    W = jnp.zeros((D_MODEL, N_COLS), jnp.float32)
    bvec = jnp.zeros((1, N_COLS), jnp.float32)

    def put(Wm, bm, col, ws, bs):
        wcat = jnp.concatenate(ws, axis=1)
        bcat = jnp.concatenate(bs, axis=1)
        Wm = Wm.at[:, col:col + wcat.shape[1]].set(wcat)
        bm = bm.at[:, col:col + bcat.shape[1]].set(bcat)
        return Wm, bm

    W, bvec = put(W, bvec, COL_QKV_S, [wq_s, wk_s, wv_s], [bq_s, bk_s, bv_s])
    W, bvec = put(W, bvec, COL_WO_S, [wo_s], [bo_s])
    W, bvec = put(W, bvec, COL_WQ_C, [wq_c], [bq_c])
    W, bvec = put(W, bvec, COL_KV_C, [wk_c, wv_c], [bk_c, bv_c])
    W, bvec = put(W, bvec, COL_WO_C, [wo_c], [bo_c])
    W, bvec = put(W, bvec, COL_W1, [w1], [b1])

    # layernorm params: torch init alpha=1, bias=0 (scalar each) for the 3 residuals
    ln = jnp.array([1.0, 0.0, 1.0, 0.0, 1.0, 0.0], dtype=jnp.float32)
    return ln, W, bvec


def decoder_block_ref(x, enc, tgt_mask, src_mask, params):
    ln, W, bvec = params
    tbias = jnp.where(tgt_mask == 0.0, -1.0e9, 0.0).astype(jnp.float32)
    sbias = jnp.where(src_mask == 0.0, -1.0e9, 0.0).astype(jnp.float32)
    y = _block_math(x.reshape(B * S, D_MODEL), enc.reshape(B * S_SRC, D_MODEL),
                    tbias, sbias, ln, W, bvec, approx_recip=False)
    return y.reshape(B, S, D_MODEL)


if __name__ == "__main__":
    key = jax.random.PRNGKey(0)
    k_x, k_enc, k_p = jax.random.split(key, 3)

    x = jax.random.normal(k_x, (B, S, D_MODEL), jnp.float32)
    enc = jax.random.normal(k_enc, (B, S_SRC, D_MODEL), jnp.float32)
    tgt_mask = jnp.tril(jnp.ones((S, S), jnp.float32))      # causal mask
    src_mask = jnp.ones((S, S_SRC), jnp.float32)            # no source masking

    params = make_params(k_p)

    out = decoder_block(x, enc, tgt_mask, src_mask, params)
    out = jax.block_until_ready(out)

    # pure-JAX reference (same math, exact division instead of EUP approx reciprocal)
    ref = decoder_block_ref(x, enc, tgt_mask, src_mask, params)

    assert out.shape == (B, S, D_MODEL)
    # tolerance accounts for the approximate EUP reciprocal used in the kernel softmax
    assert jnp.allclose(out, ref, rtol=1e-2, atol=1e-2), "mismatch vs reference"

    print("KERNEL_OK")
</pallas_src>

<mosaic_0001>
module attributes {stable_mosaic.version = 11 : i64} {
  func.func @_decoder_kernel(%arg0: memref<6xf32, #tpu.memory_space<smem>>, %arg1: memref<16x32xf32, #tpu.memory_space<vmem>>, %arg2: memref<16x32xf32, #tpu.memory_space<vmem>>, %arg3: memref<8x8xf32, #tpu.memory_space<vmem>>, %arg4: memref<8x8xf32, #tpu.memory_space<vmem>>, %arg5: memref<32x768xf32, #tpu.memory_space<vmem>>, %arg6: memref<1x768xf32, #tpu.memory_space<vmem>>, %arg7: memref<16x32xf32, #tpu.memory_space<vmem>>) attributes {dimension_semantics = [], scalar_prefetch = 0 : i64, scratch_operands = 0 : i64, tpu.core_type = #tpu.core_type<tc>} {
    %c0 = arith.constant 0 : index
    %c0_0 = arith.constant 0 : index
    %0 = vector.load %arg1[%c0, %c0_0] : memref<16x32xf32, #tpu.memory_space<vmem>>, vector<16x32xf32>
    %c0_1 = arith.constant 0 : index
    %c0_2 = arith.constant 0 : index
    %1 = vector.load %arg2[%c0_1, %c0_2] : memref<16x32xf32, #tpu.memory_space<vmem>>, vector<16x32xf32>
    %c0_3 = arith.constant 0 : index
    %c0_4 = arith.constant 0 : index
    %2 = vector.load %arg3[%c0_3, %c0_4] : memref<8x8xf32, #tpu.memory_space<vmem>>, vector<8x8xf32>
    %c0_5 = arith.constant 0 : index
    %c0_6 = arith.constant 0 : index
    %3 = vector.load %arg4[%c0_5, %c0_6] : memref<8x8xf32, #tpu.memory_space<vmem>>, vector<8x8xf32>
    %c0_7 = arith.constant 0 : index
    %4 = memref.load %arg0[%c0_7] : memref<6xf32, #tpu.memory_space<smem>>
    %c1 = arith.constant 1 : index
    %5 = memref.load %arg0[%c1] : memref<6xf32, #tpu.memory_space<smem>>
    %cst = arith.constant dense<0.000000e+00> : vector<16xf32>
    %6 = vector.multi_reduction <add>, %0, %cst [1] : vector<16x32xf32> to vector<16xf32>
    %7 = vector.shape_cast %6 : vector<16xf32> to vector<16x1xf32>
    %cst_8 = arith.constant 3.200000e+01 : f32
    %8 = vector.broadcast %cst_8 : f32 to vector<16x1xf32>
    %9 = arith.divf %7, %8 : vector<16x1xf32>
    %10 = vector.broadcast %9 : vector<16x1xf32> to vector<16x32xf32>
    %11 = arith.subf %0, %10 : vector<16x32xf32>
    %12 = arith.mulf %11, %11 : vector<16x32xf32>
    %cst_9 = arith.constant dense<0.000000e+00> : vector<16xf32>
    %13 = vector.multi_reduction <add>, %12, %cst_9 [1] : vector<16x32xf32> to vector<16xf32>
    %14 = vector.shape_cast %13 : vector<16xf32> to vector<16x1xf32>
    %cst_10 = arith.constant 0.0322580636 : f32
    %15 = vector.broadcast %cst_10 : f32 to vector<16x1xf32>
    %16 = arith.mulf %14, %15 : vector<16x1xf32>
    %17 = vector.broadcast %9 : vector<16x1xf32> to vector<16x32xf32>
    %18 = arith.subf %0, %17 : vector<16x32xf32>
    %19 = vector.broadcast %4 : f32 to vector<16x32xf32>
    %20 = arith.mulf %19, %18 : vector<16x32xf32>
    %21 = math.sqrt %16 : vector<16x1xf32>
    %cst_11 = arith.constant 9.99999997E-7 : f32
    %22 = vector.broadcast %cst_11 : f32 to vector<16x1xf32>
    %23 = arith.addf %21, %22 : vector<16x1xf32>
    %24 = vector.broadcast %23 : vector<16x1xf32> to vector<16x32xf32>
    %25 = arith.divf %20, %24 : vector<16x32xf32>
    %26 = vector.broadcast %5 : f32 to vector<16x32xf32>
    %27 = arith.addf %25, %26 : vector<16x32xf32>
    %c0_12 = arith.constant 0 : index
    %c0_13 = arith.constant 0 : index
    %28 = vector.load %arg5[%c0_12, %c0_13] : memref<32x768xf32, #tpu.memory_space<vmem>>, vector<32x96xf32>
    %c0_14 = arith.constant 0 : index
    %c0_15 = arith.constant 0 : index
    %29 = vector.load %arg6[%c0_14, %c0_15] : memref<1x768xf32, #tpu.memory_space<vmem>>, vector<1x96xf32>
    %cst_16 = arith.constant dense<0.000000e+00> : vector<16x96xf32>
    %30 = tpu.matmul %27, %28, %cst_16 {dimension_numbers = #tpu.dot_dimension_numbers<[1], [0], [0], [1], [0, 0, 1, 1], [], []>} : vector<16x32xf32>, vector<32x96xf32>, vector<16x96xf32> -> vector<16x96xf32>
    %31 = vector.broadcast %29 : vector<1x96xf32> to vector<16x96xf32>
    %32 = arith.addf %30, %31 : vector<16x96xf32>
    %c0_17 = arith.constant 0 : index
    %c128 = arith.constant 128 : index
    %33 = vector.load %arg5[%c0_17, %c128] : memref<32x768xf32, #tpu.memory_space<vmem>>, vector<32x32xf32>
    %c0_18 = arith.constant 0 : index
    %c128_19 = arith.constant 128 : index
    %34 = vector.load %arg6[%c0_18, %c128_19] : memref<1x768xf32, #tpu.memory_space<vmem>>, vector<1x32xf32>
    %35 = vector.extract_strided_slice %32 {offsets = [0, 0], sizes = [16, 32], strides = [1, 1]} : vector<16x96xf32> to vector<16x32xf32>
    %36 = vector.extract_strided_slice %32 {offsets = [0, 32], sizes = [16, 32], strides = [1, 1]} : vector<16x96xf32> to vector<16x32xf32>
    %37 = vector.extract_strided_slice %32 {offsets = [0, 64], sizes = [16, 32], strides = [1, 1]} : vector<16x96xf32> to vector<16x32xf32>
    %38 = vector.shape_cast %35 : vector<16x32xf32> to vector<2x8x32xf32>
    %39 = vector.shape_cast %36 : vector<16x32xf32> to vector<2x8x32xf32>
    %40 = vector.shape_cast %37 : vector<16x32xf32> to vector<2x8x32xf32>
    %41 = vector.shape_cast %2 : vector<8x8xf32> to vector<1x8x8xf32>
    %42 = vector.extract_strided_slice %38 {offsets = [0, 0, 0], sizes = [2, 8, 8], strides = [1, 1, 1]} : vector<2x8x32xf32> to vector<2x8x8xf32>
    %43 = vector.extract_strided_slice %39 {offsets = [0, 0, 0], sizes = [2, 8, 8], strides = [1, 1, 1]} : vector<2x8x32xf32> to vector<2x8x8xf32>
    %44 = vector.extract_strided_slice %40 {offsets = [0, 0, 0], sizes = [2, 8, 8], strides = [1, 1, 1]} : vector<2x8x32xf32> to vector<2x8x8xf32>
    "tpu.trace_start"() <{level = 10 : i32, message = "bqd,bkd->bqk"}> : () -> ()
    %cst_20 = arith.constant dense<0.000000e+00> : vector<2x8x8xf32>
    %45 = tpu.matmul %42, %43, %cst_20 {dimension_numbers = #tpu.dot_dimension_numbers<[2], [2], [1], [1], [0, 0, 0, 1, 1, 1], [0], [0]>} : vector<2x8x8xf32>, vector<2x8x8xf32>, vector<2x8x8xf32> -> vector<2x8x8xf32>
    "tpu.trace_stop"() : () -> ()
    %cst_21 = arith.constant 0.353553385 : f32
    %46 = vector.broadcast %cst_21 : f32 to vector<2x8x8xf32>
    %47 = arith.mulf %45, %46 : vector<2x8x8xf32>
    %48 = vector.broadcast %41 : vector<1x8x8xf32> to vector<2x8x8xf32>
    %49 = arith.addf %47, %48 : vector<2x8x8xf32>
    %cst_22 = arith.constant dense<0xFF800000> : vector<2x8xf32>
    %50 = vector.multi_reduction <maximumf>, %49, %cst_22 [2] : vector<2x8x8xf32> to vector<2x8xf32>
    %51 = vector.shape_cast %50 : vector<2x8xf32> to vector<2x8x1xf32>
    %52 = vector.broadcast %51 : vector<2x8x1xf32> to vector<2x8x8xf32>
    %53 = arith.subf %49, %52 : vector<2x8x8xf32>
    %54 = math.exp %53 : vector<2x8x8xf32>
    %cst_23 = arith.constant dense<0.000000e+00> : vector<2x8xf32>
    %55 = vector.multi_reduction <add>, %54, %cst_23 [2] : vector<2x8x8xf32> to vector<2x8xf32>
    %56 = vector.shape_cast %55 : vector<2x8xf32> to vector<2x8x1xf32>
    %57 = tpu.reciprocal %56 {approx = true} : vector<2x8x1xf32> -> vector<2x8x1xf32>
    %58 = vector.broadcast %57 : vector<2x8x1xf32> to vector<2x8x8xf32>
    %59 = arith.mulf %54, %58 : vector<2x8x8xf32>
    "tpu.trace_start"() <{level = 10 : i32, message = "bqk,bkd->bqd"}> : () -> ()
    %cst_24 = arith.constant dense<0.000000e+00> : vector<2x8x8xf32>
    %60 = tpu.matmul %59, %44, %cst_24 {dimension_numbers = #tpu.dot_dimension_numbers<[2], [1], [1], [2], [0, 0, 0, 1, 1, 2], [0], [0]>} : vector<2x8x8xf32>, vector<2x8x8xf32>, vector<2x8x8xf32> -> vector<2x8x8xf32>
    "tpu.trace_stop"() : () -> ()
    %61 = vector.shape_cast %60 : vector<2x8x8xf32> to vector<16x8xf32>
    %62 = vector.extract_strided_slice %33 {offsets = [0, 0], sizes = [8, 32], strides = [1, 1]} : vector<32x32xf32> to vector<8x32xf32>
    %cst_25 = arith.constant dense<0.000000e+00> : vector<16x32xf32>
    %63 = tpu.matmul %61, %62, %cst_25 {dimension_numbers = #tpu.dot_dimension_numbers<[1], [0], [0], [1], [0, 0, 1, 1], [], []>} : vector<16x8xf32>, vector<8x32xf32>, vector<16x32xf32> -> vector<16x32xf32>
    %64 = vector.extract_strided_slice %38 {offsets = [0, 0, 8], sizes = [2, 8, 8], strides = [1, 1, 1]} : vector<2x8x32xf32> to vector<2x8x8xf32>
    %65 = vector.extract_strided_slice %39 {offsets = [0, 0, 8], sizes = [2, 8, 8], strides = [1, 1, 1]} : vector<2x8x32xf32> to vector<2x8x8xf32>
    %66 = vector.extract_strided_slice %40 {offsets = [0, 0, 8], sizes = [2, 8, 8], strides = [1, 1, 1]} : vector<2x8x32xf32> to vector<2x8x8xf32>
    "tpu.trace_start"() <{level = 10 : i32, message = "bqd,bkd->bqk"}> : () -> ()
    %cst_26 = arith.constant dense<0.000000e+00> : vector<2x8x8xf32>
    %67 = tpu.matmul %64, %65, %cst_26 {dimension_numbers = #tpu.dot_dimension_numbers<[2], [2], [1], [1], [0, 0, 0, 1, 1, 1], [0], [0]>} : vector<2x8x8xf32>, vector<2x8x8xf32>, vector<2x8x8xf32> -> vector<2x8x8xf32>
    "tpu.trace_stop"() : () -> ()
    %cst_27 = arith.constant 0.353553385 : f32
    %68 = vector.broadcast %cst_27 : f32 to vector<2x8x8xf32>
    %69 = arith.mulf %67, %68 : vector<2x8x8xf32>
    %70 = vector.broadcast %41 : vector<1x8x8xf32> to vector<2x8x8xf32>
    %71 = arith.addf %69, %70 : vector<2x8x8xf32>
    %cst_28 = arith.constant dense<0xFF800000> : vector<2x8xf32>
    %72 = vector.multi_reduction <maximumf>, %71, %cst_28 [2] : vector<2x8x8xf32> to vector<2x8xf32>
    %73 = vector.shape_cast %72 : vector<2x8xf32> to vector<2x8x1xf32>
    %74 = vector.broadcast %73 : vector<2x8x1xf32> to vector<2x8x8xf32>
    %75 = arith.subf %71, %74 : vector<2x8x8xf32>
    %76 = math.exp %75 : vector<2x8x8xf32>
    %cst_29 = arith.constant dense<0.000000e+00> : vector<2x8xf32>
    %77 = vector.multi_reduction <add>, %76, %cst_29 [2] : vector<2x8x8xf32> to vector<2x8xf32>
    %78 = vector.shape_cast %77 : vector<2x8xf32> to vector<2x8x1xf32>
    %79 = tpu.reciprocal %78 {approx = true} : vector<2x8x1xf32> -> vector<2x8x1xf32>
    %80 = vector.broadcast %79 : vector<2x8x1xf32> to vector<2x8x8xf32>
    %81 = arith.mulf %76, %80 : vector<2x8x8xf32>
    "tpu.trace_start"() <{level = 10 : i32, message = "bqk,bkd->bqd"}> : () -> ()
    %cst_30 = arith.constant dense<0.000000e+00> : vector<2x8x8xf32>
    %82 = tpu.matmul %81, %66, %cst_30 {dimension_numbers = #tpu.dot_dimension_numbers<[2], [1], [1], [2], [0, 0, 0, 1, 1, 2], [0], [0]>} : vector<2x8x8xf32>, vector<2x8x8xf32>, vector<2x8x8xf32> -> vector<2x8x8xf32>
    "tpu.trace_stop"() : () -> ()
    %83 = vector.shape_cast %82 : vector<2x8x8xf32> to vector<16x8xf32>
    %84 = vector.extract_strided_slice %33 {offsets = [8, 0], sizes = [8, 32], strides = [1, 1]} : vector<32x32xf32> to vector<8x32xf32>
    %cst_31 = arith.constant dense<0.000000e+00> : vector<16x32xf32>
    %85 = tpu.matmul %83, %84, %cst_31 {dimension_numbers = #tpu.dot_dimension_numbers<[1], [0], [0], [1], [0, 0, 1, 1], [], []>} : vector<16x8xf32>, vector<8x32xf32>, vector<16x32xf32> -> vector<16x32xf32>
    %86 = arith.addf %63, %85 : vector<16x32xf32>
    %87 = vector.extract_strided_slice %38 {offsets = [0, 0, 16], sizes = [2, 8, 8], strides = [1, 1, 1]} : vector<2x8x32xf32> to vector<2x8x8xf32>
    %88 = vector.extract_strided_slice %39 {offsets = [0, 0, 16], sizes = [2, 8, 8], strides = [1, 1, 1]} : vector<2x8x32xf32> to vector<2x8x8xf32>
    %89 = vector.extract_strided_slice %40 {offsets = [0, 0, 16], sizes = [2, 8, 8], strides = [1, 1, 1]} : vector<2x8x32xf32> to vector<2x8x8xf32>
    "tpu.trace_start"() <{level = 10 : i32, message = "bqd,bkd->bqk"}> : () -> ()
    %cst_32 = arith.constant dense<0.000000e+00> : vector<2x8x8xf32>
    %90 = tpu.matmul %87, %88, %cst_32 {dimension_numbers = #tpu.dot_dimension_numbers<[2], [2], [1], [1], [0, 0, 0, 1, 1, 1], [0], [0]>} : vector<2x8x8xf32>, vector<2x8x8xf32>, vector<2x8x8xf32> -> vector<2x8x8xf32>
    "tpu.trace_stop"() : () -> ()
    %cst_33 = arith.constant 0.353553385 : f32
    %91 = vector.broadcast %cst_33 : f32 to vector<2x8x8xf32>
    %92 = arith.mulf %90, %91 : vector<2x8x8xf32>
    %93 = vector.broadcast %41 : vector<1x8x8xf32> to vector<2x8x8xf32>
    %94 = arith.addf %92, %93 : vector<2x8x8xf32>
    %cst_34 = arith.constant dense<0xFF800000> : vector<2x8xf32>
    %95 = vector.multi_reduction <maximumf>, %94, %cst_34 [2] : vector<2x8x8xf32> to vector<2x8xf32>
    %96 = vector.shape_cast %95 : vector<2x8xf32> to vector<2x8x1xf32>
    %97 = vector.broadcast %96 : vector<2x8x1xf32> to vector<2x8x8xf32>
    %98 = arith.subf %94, %97 : vector<2x8x8xf32>
    %99 = math.exp %98 : vector<2x8x8xf32>
    %cst_35 = arith.constant dense<0.000000e+00> : vector<2x8xf32>
    %100 = vector.multi_reduction <add>, %99, %cst_35 [2] : vector<2x8x8xf32> to vector<2x8xf32>
    %101 = vector.shape_cast %100 : vector<2x8xf32> to vector<2x8x1xf32>
    %102 = tpu.reciprocal %101 {approx = true} : vector<2x8x1xf32> -> vector<2x8x1xf32>
    %103 = vector.broadcast %102 : vector<2x8x1xf32> to vector<2x8x8xf32>
    %104 = arith.mulf %99, %103 : vector<2x8x8xf32>
    "tpu.trace_start"() <{level = 10 : i32, message = "bqk,bkd->bqd"}> : () -> ()
    %cst_36 = arith.constant dense<0.000000e+00> : vector<2x8x8xf32>
    %105 = tpu.matmul %104, %89, %cst_36 {dimension_numbers = #tpu.dot_dimension_numbers<[2], [1], [1], [2], [0, 0, 0, 1, 1, 2], [0], [0]>} : vector<2x8x8xf32>, vector<2x8x8xf32>, vector<2x8x8xf32> -> vector<2x8x8xf32>
    "tpu.trace_stop"() : () -> ()
    %106 = vector.shape_cast %105 : vector<2x8x8xf32> to vector<16x8xf32>
    %107 = vector.extract_strided_slice %33 {offsets = [16, 0], sizes = [8, 32], strides = [1, 1]} : vector<32x32xf32> to vector<8x32xf32>
    %cst_37 = arith.constant dense<0.000000e+00> : vector<16x32xf32>
    %108 = tpu.matmul %106, %107, %cst_37 {dimension_numbers = #tpu.dot_dimension_numbers<[1], [0], [0], [1], [0, 0, 1, 1], [], []>} : vector<16x8xf32>, vector<8x32xf32>, vector<16x32xf32> -> vector<16x32xf32>
    %109 = arith.addf %86, %108 : vector<16x32xf32>
    %110 = vector.extract_strided_slice %38 {offsets = [0, 0, 24], sizes = [2, 8, 8], strides = [1, 1, 1]} : vector<2x8x32xf32> to vector<2x8x8xf32>
    %111 = vector.extract_strided_slice %39 {offsets = [0, 0, 24], sizes = [2, 8, 8], strides = [1, 1, 1]} : vector<2x8x32xf32> to vector<2x8x8xf32>
    %112 = vector.extract_strided_slice %40 {offsets = [0, 0, 24], sizes = [2, 8, 8], strides = [1, 1, 1]} : vector<2x8x32xf32> to vector<2x8x8xf32>
    "tpu.trace_start"() <{level = 10 : i32, message = "bqd,bkd->bqk"}> : () -> ()
    %cst_38 = arith.constant dense<0.000000e+00> : vector<2x8x8xf32>
    %113 = tpu.matmul %110, %111, %cst_38 {dimension_numbers = #tpu.dot_dimension_numbers<[2], [2], [1], [1], [0, 0, 0, 1, 1, 1], [0], [0]>} : vector<2x8x8xf32>, vector<2x8x8xf32>, vector<2x8x8xf32> -> vector<2x8x8xf32>
    "tpu.trace_stop"() : () -> ()
    %cst_39 = arith.constant 0.353553385 : f32
    %114 = vector.broadcast %cst_39 : f32 to vector<2x8x8xf32>
    %115 = arith.mulf %113, %114 : vector<2x8x8xf32>
    %116 = vector.broadcast %41 : vector<1x8x8xf32> to vector<2x8x8xf32>
    %117 = arith.addf %115, %116 : vector<2x8x8xf32>
    %cst_40 = arith.constant dense<0xFF800000> : vector<2x8xf32>
    %118 = vector.multi_reduction <maximumf>, %117, %cst_40 [2] : vector<2x8x8xf32> to vector<2x8xf32>
    %119 = vector.shape_cast %118 : vector<2x8xf32> to vector<2x8x1xf32>
    %120 = vector.broadcast %119 : vector<2x8x1xf32> to vector<2x8x8xf32>
    %121 = arith.subf %117, %120 : vector<2x8x8xf32>
    %122 = math.exp %121 : vector<2x8x8xf32>
    %cst_41 = arith.constant dense<0.000000e+00> : vector<2x8xf32>
    %123 = vector.multi_reduction <add>, %122, %cst_41 [2] : vector<2x8x8xf32> to vector<2x8xf32>
    %124 = vector.shape_cast %123 : vector<2x8xf32> to vector<2x8x1xf32>
    %125 = tpu.reciprocal %124 {approx = true} : vector<2x8x1xf32> -> vector<2x8x1xf32>
    %126 = vector.broadcast %125 : vector<2x8x1xf32> to vector<2x8x8xf32>
    %127 = arith.mulf %122, %126 : vector<2x8x8xf32>
    "tpu.trace_start"() <{level = 10 : i32, message = "bqk,bkd->bqd"}> : () -> ()
    %cst_42 = arith.constant dense<0.000000e+00> : vector<2x8x8xf32>
    %128 = tpu.matmul %127, %112, %cst_42 {dimension_numbers = #tpu.dot_dimension_numbers<[2], [1], [1], [2], [0, 0, 0, 1, 1, 2], [0], [0]>} : vector<2x8x8xf32>, vector<2x8x8xf32>, vector<2x8x8xf32> -> vector<2x8x8xf32>
    "tpu.trace_stop"() : () -> ()
    %129 = vector.shape_cast %128 : vector<2x8x8xf32> to vector<16x8xf32>
    %130 = vector.extract_strided_slice %33 {offsets = [24, 0], sizes = [8, 32], strides = [1, 1]} : vector<32x32xf32> to vector<8x32xf32>
    %cst_43 = arith.constant dense<0.000000e+00> : vector<16x32xf32>
    %131 = tpu.matmul %129, %130, %cst_43 {dimension_numbers = #tpu.dot_dimension_numbers<[1], [0], [0], [1], [0, 0, 1, 1], [], []>} : vector<16x8xf32>, vector<8x32xf32>, vector<16x32xf32> -> vector<16x32xf32>
    %132 = arith.addf %109, %131 : vector<16x32xf32>
    %133 = vector.broadcast %34 : vector<1x32xf32> to vector<16x32xf32>
    %134 = arith.addf %132, %133 : vector<16x32xf32>
    %135 = arith.addf %0, %134 : vector<16x32xf32>
    %c2 = arith.constant 2 : index
    %136 = memref.load %arg0[%c2] : memref<6xf32, #tpu.memory_space<smem>>
    %c3 = arith.constant 3 : index
    %137 = memref.load %arg0[%c3] : memref<6xf32, #tpu.memory_space<smem>>
    %cst_44 = arith.constant dense<0.000000e+00> : vector<16xf32>
    %138 = vector.multi_reduction <add>, %135, %cst_44 [1] : vector<16x32xf32> to vector<16xf32>
    %139 = vector.shape_cast %138 : vector<16xf32> to vector<16x1xf32>
    %cst_45 = arith.constant 3.200000e+01 : f32
    %140 = vector.broadcast %cst_45 : f32 to vector<16x1xf32>
    %141 = arith.divf %139, %140 : vector<16x1xf32>
    %142 = vector.broadcast %141 : vector<16x1xf32> to vector<16x32xf32>
    %143 = arith.subf %135, %142 : vector<16x32xf32>
    %144 = arith.mulf %143, %143 : vector<16x32xf32>
    %cst_46 = arith.constant dense<0.000000e+00> : vector<16xf32>
    %145 = vector.multi_reduction <add>, %144, %cst_46 [1] : vector<16x32xf32> to vector<16xf32>
    %146 = vector.shape_cast %145 : vector<16xf32> to vector<16x1xf32>
    %cst_47 = arith.constant 0.0322580636 : f32
    %147 = vector.broadcast %cst_47 : f32 to vector<16x1xf32>
    %148 = arith.mulf %146, %147 : vector<16x1xf32>
    %149 = vector.broadcast %141 : vector<16x1xf32> to vector<16x32xf32>
    %150 = arith.subf %135, %149 : vector<16x32xf32>
    %151 = vector.broadcast %136 : f32 to vector<16x32xf32>
    %152 = arith.mulf %151, %150 : vector<16x32xf32>
    %153 = math.sqrt %148 : vector<16x1xf32>
    %cst_48 = arith.constant 9.99999997E-7 : f32
    %154 = vector.broadcast %cst_48 : f32 to vector<16x1xf32>
    %155 = arith.addf %153, %154 : vector<16x1xf32>
    %156 = vector.broadcast %155 : vector<16x1xf32> to vector<16x32xf32>
    %157 = arith.divf %152, %156 : vector<16x32xf32>
    %158 = vector.broadcast %137 : f32 to vector<16x32xf32>
    %159 = arith.addf %157, %158 : vector<16x32xf32>
    %c0_49 = arith.constant 0 : index
    %c256 = arith.constant 256 : index
    %160 = vector.load %arg5[%c0_49, %c256] : memref<32x768xf32, #tpu.memory_space<vmem>>, vector<32x32xf32>
    %c0_50 = arith.constant 0 : index
    %c256_51 = arith.constant 256 : index
    %161 = vector.load %arg6[%c0_50, %c256_51] : memref<1x768xf32, #tpu.memory_space<vmem>>, vector<1x32xf32>
    %cst_52 = arith.constant dense<0.000000e+00> : vector<16x32xf32>
    %162 = tpu.matmul %159, %160, %cst_52 {dimension_numbers = #tpu.dot_dimension_numbers<[1], [0], [0], [1], [0, 0, 1, 1], [], []>} : vector<16x32xf32>, vector<32x32xf32>, vector<16x32xf32> -> vector<16x32xf32>
    %163 = vector.broadcast %161 : vector<1x32xf32> to vector<16x32xf32>
    %164 = arith.addf %162, %163 : vector<16x32xf32>
    %c0_53 = arith.constant 0 : index
    %c384 = arith.constant 384 : index
    %165 = vector.load %arg5[%c0_53, %c384] : memref<32x768xf32, #tpu.memory_space<vmem>>, vector<32x64xf32>
    %c0_54 = arith.constant 0 : index
    %c384_55 = arith.constant 384 : index
    %166 = vector.load %arg6[%c0_54, %c384_55] : memref<1x768xf32, #tpu.memory_space<vmem>>, vector<1x64xf32>
    %cst_56 = arith.constant dense<0.000000e+00> : vector<16x64xf32>
    %167 = tpu.matmul %1, %165, %cst_56 {dimension_numbers = #tpu.dot_dimension_numbers<[1], [0], [0], [1], [0, 0, 1, 1], [], []>} : vector<16x32xf32>, vector<32x64xf32>, vector<16x64xf32> -> vector<16x64xf32>
    %168 = vector.broadcast %166 : vector<1x64xf32> to vector<16x64xf32>
    %169 = arith.addf %167, %168 : vector<16x64xf32>
    %c0_57 = arith.constant 0 : index
    %c512 = arith.constant 512 : index
    %170 = vector.load %arg5[%c0_57, %c512] : memref<32x768xf32, #tpu.memory_space<vmem>>, vector<32x32xf32>
    %c0_58 = arith.constant 0 : index
    %c512_59 = arith.constant 512 : index
    %171 = vector.load %arg6[%c0_58, %c512_59] : memref<1x768xf32, #tpu.memory_space<vmem>>, vector<1x32xf32>
    %172 = vector.extract_strided_slice %169 {offsets = [0, 0], sizes = [16, 32], strides = [1, 1]} : vector<16x64xf32> to vector<16x32xf32>
    %173 = vector.extract_strided_slice %169 {offsets = [0, 32], sizes = [16, 32], strides = [1, 1]} : vector<16x64xf32> to vector<16x32xf32>
    %174 = vector.shape_cast %164 : vector<16x32xf32> to vector<2x8x32xf32>
    %175 = vector.shape_cast %172 : vector<16x32xf32> to vector<2x8x32xf32>
    %176 = vector.shape_cast %173 : vector<16x32xf32> to vector<2x8x32xf32>
    %177 = vector.shape_cast %3 : vector<8x8xf32> to vector<1x8x8xf32>
    %178 = vector.extract_strided_slice %174 {offsets = [0, 0, 0], sizes = [2, 8, 8], strides = [1, 1, 1]} : vector<2x8x32xf32> to vector<2x8x8xf32>
    %179 = vector.extract_strided_slice %175 {offsets = [0, 0, 0], sizes = [2, 8, 8], strides = [1, 1, 1]} : vector<2x8x32xf32> to vector<2x8x8xf32>
    %180 = vector.extract_strided_slice %176 {offsets = [0, 0, 0], sizes = [2, 8, 8], strides = [1, 1, 1]} : vector<2x8x32xf32> to vector<2x8x8xf32>
    "tpu.trace_start"() <{level = 10 : i32, message = "bqd,bkd->bqk"}> : () -> ()
    %cst_60 = arith.constant dense<0.000000e+00> : vector<2x8x8xf32>
    %181 = tpu.matmul %178, %179, %cst_60 {dimension_numbers = #tpu.dot_dimension_numbers<[2], [2], [1], [1], [0, 0, 0, 1, 1, 1], [0], [0]>} : vector<2x8x8xf32>, vector<2x8x8xf32>, vector<2x8x8xf32> -> vector<2x8x8xf32>
    "tpu.trace_stop"() : () -> ()
    %cst_61 = arith.constant 0.353553385 : f32
    %182 = vector.broadcast %cst_61 : f32 to vector<2x8x8xf32>
    %183 = arith.mulf %181, %182 : vector<2x8x8xf32>
    %184 = vector.broadcast %177 : vector<1x8x8xf32> to vector<2x8x8xf32>
    %185 = arith.addf %183, %184 : vector<2x8x8xf32>
    %cst_62 = arith.constant dense<0xFF800000> : vector<2x8xf32>
    %186 = vector.multi_reduction <maximumf>, %185, %cst_62 [2] : vector<2x8x8xf32> to vector<2x8xf32>
    %187 = vector.shape_cast %186 : vector<2x8xf32> to vector<2x8x1xf32>
    %188 = vector.broadcast %187 : vector<2x8x1xf32> to vector<2x8x8xf32>
    %189 = arith.subf %185, %188 : vector<2x8x8xf32>
    %190 = math.exp %189 : vector<2x8x8xf32>
    %cst_63 = arith.constant dense<0.000000e+00> : vector<2x8xf32>
    %191 = vector.multi_reduction <add>, %190, %cst_63 [2] : vector<2x8x8xf32> to vector<2x8xf32>
    %192 = vector.shape_cast %191 : vector<2x8xf32> to vector<2x8x1xf32>
    %193 = tpu.reciprocal %192 {approx = true} : vector<2x8x1xf32> -> vector<2x8x1xf32>
    %194 = vector.broadcast %193 : vector<2x8x1xf32> to vector<2x8x8xf32>
    %195 = arith.mulf %190, %194 : vector<2x8x8xf32>
    "tpu.trace_start"() <{level = 10 : i32, message = "bqk,bkd->bqd"}> : () -> ()
    %cst_64 = arith.constant dense<0.000000e+00> : vector<2x8x8xf32>
    %196 = tpu.matmul %195, %180, %cst_64 {dimension_numbers = #tpu.dot_dimension_numbers<[2], [1], [1], [2], [0, 0, 0, 1, 1, 2], [0], [0]>} : vector<2x8x8xf32>, vector<2x8x8xf32>, vector<2x8x8xf32> -> vector<2x8x8xf32>
    "tpu.trace_stop"() : () -> ()
    %197 = vector.shape_cast %196 : vector<2x8x8xf32> to vector<16x8xf32>
    %198 = vector.extract_strided_slice %170 {offsets = [0, 0], sizes = [8, 32], strides = [1, 1]} : vector<32x32xf32> to vector<8x32xf32>
    %cst_65 = arith.constant dense<0.000000e+00> : vector<16x32xf32>
    %199 = tpu.matmul %197, %198, %cst_65 {dimension_numbers = #tpu.dot_dimension_numbers<[1], [0], [0], [1], [0, 0, 1, 1], [], []>} : vector<16x8xf32>, vector<8x32xf32>, vector<16x32xf32> -> vector<16x32xf32>
    %200 = vector.extract_strided_slice %174 {offsets = [0, 0, 8], sizes = [2, 8, 8], strides = [1, 1, 1]} : vector<2x8x32xf32> to vector<2x8x8xf32>
    %201 = vector.extract_strided_slice %175 {offsets = [0, 0, 8], sizes = [2, 8, 8], strides = [1, 1, 1]} : vector<2x8x32xf32> to vector<2x8x8xf32>
    %202 = vector.extract_strided_slice %176 {offsets = [0, 0, 8], sizes = [2, 8, 8], strides = [1, 1, 1]} : vector<2x8x32xf32> to vector<2x8x8xf32>
    "tpu.trace_start"() <{level = 10 : i32, message = "bqd,bkd->bqk"}> : () -> ()
    %cst_66 = arith.constant dense<0.000000e+00> : vector<2x8x8xf32>
    %203 = tpu.matmul %200, %201, %cst_66 {dimension_numbers = #tpu.dot_dimension_numbers<[2], [2], [1], [1], [0, 0, 0, 1, 1, 1], [0], [0]>} : vector<2x8x8xf32>, vector<2x8x8xf32>, vector<2x8x8xf32> -> vector<2x8x8xf32>
    "tpu.trace_stop"() : () -> ()
    %cst_67 = arith.constant 0.353553385 : f32
    %204 = vector.broadcast %cst_67 : f32 to vector<2x8x8xf32>
    %205 = arith.mulf %203, %204 : vector<2x8x8xf32>
    %206 = vector.broadcast %177 : vector<1x8x8xf32> to vector<2x8x8xf32>
    %207 = arith.addf %205, %206 : vector<2x8x8xf32>
    %cst_68 = arith.constant dense<0xFF800000> : vector<2x8xf32>
    %208 = vector.multi_reduction <maximumf>, %207, %cst_68 [2] : vector<2x8x8xf32> to vector<2x8xf32>
    %209 = vector.shape_cast %208 : vector<2x8xf32> to vector<2x8x1xf32>
    %210 = vector.broadcast %209 : vector<2x8x1xf32> to vector<2x8x8xf32>
    %211 = arith.subf %207, %210 : vector<2x8x8xf32>
    %212 = math.exp %211 : vector<2x8x8xf32>
    %cst_69 = arith.constant dense<0.000000e+00> : vector<2x8xf32>
    %213 = vector.multi_reduction <add>, %212, %cst_69 [2] : vector<2x8x8xf32> to vector<2x8xf32>
    %214 = vector.shape_cast %213 : vector<2x8xf32> to vector<2x8x1xf32>
    %215 = tpu.reciprocal %214 {approx = true} : vector<2x8x1xf32> -> vector<2x8x1xf32>
    %216 = vector.broadcast %215 : vector<2x8x1xf32> to vector<2x8x8xf32>
    %217 = arith.mulf %212, %216 : vector<2x8x8xf32>
    "tpu.trace_start"() <{level = 10 : i32, message = "bqk,bkd->bqd"}> : () -> ()
    %cst_70 = arith.constant dense<0.000000e+00> : vector<2x8x8xf32>
    %218 = tpu.matmul %217, %202, %cst_70 {dimension_numbers = #tpu.dot_dimension_numbers<[2], [1], [1], [2], [0, 0, 0, 1, 1, 2], [0], [0]>} : vector<2x8x8xf32>, vector<2x8x8xf32>, vector<2x8x8xf32> -> vector<2x8x8xf32>
    "tpu.trace_stop"() : () -> ()
    %219 = vector.shape_cast %218 : vector<2x8x8xf32> to vector<16x8xf32>
    %220 = vector.extract_strided_slice %170 {offsets = [8, 0], sizes = [8, 32], strides = [1, 1]} : vector<32x32xf32> to vector<8x32xf32>
    %cst_71 = arith.constant dense<0.000000e+00> : vector<16x32xf32>
    %221 = tpu.matmul %219, %220, %cst_71 {dimension_numbers = #tpu.dot_dimension_numbers<[1], [0], [0], [1], [0, 0, 1, 1], [], []>} : vector<16x8xf32>, vector<8x32xf32>, vector<16x32xf32> -> vector<16x32xf32>
    %222 = arith.addf %199, %221 : vector<16x32xf32>
    %223 = vector.extract_strided_slice %174 {offsets = [0, 0, 16], sizes = [2, 8, 8], strides = [1, 1, 1]} : vector<2x8x32xf32> to vector<2x8x8xf32>
    %224 = vector.extract_strided_slice %175 {offsets = [0, 0, 16], sizes = [2, 8, 8], strides = [1, 1, 1]} : vector<2x8x32xf32> to vector<2x8x8xf32>
    %225 = vector.extract_strided_slice %176 {offsets = [0, 0, 16], sizes = [2, 8, 8], strides = [1, 1, 1]} : vector<2x8x32xf32> to vector<2x8x8xf32>
    "tpu.trace_start"() <{level = 10 : i32, message = "bqd,bkd->bqk"}> : () -> ()
    %cst_72 = arith.constant dense<0.000000e+00> : vector<2x8x8xf32>
    %226 = tpu.matmul %223, %224, %cst_72 {dimension_numbers = #tpu.dot_dimension_numbers<[2], [2], [1], [1], [0, 0, 0, 1, 1, 1], [0], [0]>} : vector<2x8x8xf32>, vector<2x8x8xf32>, vector<2x8x8xf32> -> vector<2x8x8xf32>
    "tpu.trace_stop"() : () -> ()
    %cst_73 = arith.constant 0.353553385 : f32
    %227 = vector.broadcast %cst_73 : f32 to vector<2x8x8xf32>
    %228 = arith.mulf %226, %227 : vector<2x8x8xf32>
    %229 = vector.broadcast %177 : vector<1x8x8xf32> to vector<2x8x8xf32>
    %230 = arith.addf %228, %229 : vector<2x8x8xf32>
    %cst_74 = arith.constant dense<0xFF800000> : vector<2x8xf32>
    %231 = vector.multi_reduction <maximumf>, %230, %cst_74 [2] : vector<2x8x8xf32> to vector<2x8xf32>
    %232 = vector.shape_cast %231 : vector<2x8xf32> to vector<2x8x1xf32>
    %233 = vector.broadcast %232 : vector<2x8x1xf32> to vector<2x8x8xf32>
    %234 = arith.subf %230, %233 : vector<2x8x8xf32>
    %235 = math.exp %234 : vector<2x8x8xf32>
    %cst_75 = arith.constant dense<0.000000e+00> : vector<2x8xf32>
    %236 = vector.multi_reduction <add>, %235, %cst_75 [2] : vector<2x8x8xf32> to vector<2x8xf32>
    %237 = vector.shape_cast %236 : vector<2x8xf32> to vector<2x8x1xf32>
    %238 = tpu.reciprocal %237 {approx = true} : vector<2x8x1xf32> -> vector<2x8x1xf32>
    %239 = vector.broadcast %238 : vector<2x8x1xf32> to vector<2x8x8xf32>
    %240 = arith.mulf %235, %239 : vector<2x8x8xf32>
    "tpu.trace_start"() <{level = 10 : i32, message = "bqk,bkd->bqd"}> : () -> ()
    %cst_76 = arith.constant dense<0.000000e+00> : vector<2x8x8xf32>
    %241 = tpu.matmul %240, %225, %cst_76 {dimension_numbers = #tpu.dot_dimension_numbers<[2], [1], [1], [2], [0, 0, 0, 1, 1, 2], [0], [0]>} : vector<2x8x8xf32>, vector<2x8x8xf32>, vector<2x8x8xf32> -> vector<2x8x8xf32>
    "tpu.trace_stop"() : () -> ()
    %242 = vector.shape_cast %241 : vector<2x8x8xf32> to vector<16x8xf32>
    %243 = vector.extract_strided_slice %170 {offsets = [16, 0], sizes = [8, 32], strides = [1, 1]} : vector<32x32xf32> to vector<8x32xf32>
    %cst_77 = arith.constant dense<0.000000e+00> : vector<16x32xf32>
    %244 = tpu.matmul %242, %243, %cst_77 {dimension_numbers = #tpu.dot_dimension_numbers<[1], [0], [0], [1], [0, 0, 1, 1], [], []>} : vector<16x8xf32>, vector<8x32xf32>, vector<16x32xf32> -> vector<16x32xf32>
    %245 = arith.addf %222, %244 : vector<16x32xf32>
    %246 = vector.extract_strided_slice %174 {offsets = [0, 0, 24], sizes = [2, 8, 8], strides = [1, 1, 1]} : vector<2x8x32xf32> to vector<2x8x8xf32>
    %247 = vector.extract_strided_slice %175 {offsets = [0, 0, 24], sizes = [2, 8, 8], strides = [1, 1, 1]} : vector<2x8x32xf32> to vector<2x8x8xf32>
    %248 = vector.extract_strided_slice %176 {offsets = [0, 0, 24], sizes = [2, 8, 8], strides = [1, 1, 1]} : vector<2x8x32xf32> to vector<2x8x8xf32>
    "tpu.trace_start"() <{level = 10 : i32, message = "bqd,bkd->bqk"}> : () -> ()
    %cst_78 = arith.constant dense<0.000000e+00> : vector<2x8x8xf32>
    %249 = tpu.matmul %246, %247, %cst_78 {dimension_numbers = #tpu.dot_dimension_numbers<[2], [2], [1], [1], [0, 0, 0, 1, 1, 1], [0], [0]>} : vector<2x8x8xf32>, vector<2x8x8xf32>, vector<2x8x8xf32> -> vector<2x8x8xf32>
    "tpu.trace_stop"() : () -> ()
    %cst_79 = arith.constant 0.353553385 : f32
    %250 = vector.broadcast %cst_79 : f32 to vector<2x8x8xf32>
    %251 = arith.mulf %249, %250 : vector<2x8x8xf32>
    %252 = vector.broadcast %177 : vector<1x8x8xf32> to vector<2x8x8xf32>
    %253 = arith.addf %251, %252 : vector<2x8x8xf32>
    %cst_80 = arith.constant dense<0xFF800000> : vector<2x8xf32>
    %254 = vector.multi_reduction <maximumf>, %253, %cst_80 [2] : vector<2x8x8xf32> to vector<2x8xf32>
    %255 = vector.shape_cast %254 : vector<2x8xf32> to vector<2x8x1xf32>
    %256 = vector.broadcast %255 : vector<2x8x1xf32> to vector<2x8x8xf32>
    %257 = arith.subf %253, %256 : vector<2x8x8xf32>
    %258 = math.exp %257 : vector<2x8x8xf32>
    %cst_81 = arith.constant dense<0.000000e+00> : vector<2x8xf32>
    %259 = vector.multi_reduction <add>, %258, %cst_81 [2] : vector<2x8x8xf32> to vector<2x8xf32>
    %260 = vector.shape_cast %259 : vector<2x8xf32> to vector<2x8x1xf32>
    %261 = tpu.reciprocal %260 {approx = true} : vector<2x8x1xf32> -> vector<2x8x1xf32>
    %262 = vector.broadcast %261 : vector<2x8x1xf32> to vector<2x8x8xf32>
    %263 = arith.mulf %258, %262 : vector<2x8x8xf32>
    "tpu.trace_start"() <{level = 10 : i32, message = "bqk,bkd->bqd"}> : () -> ()
    %cst_82 = arith.constant dense<0.000000e+00> : vector<2x8x8xf32>
    %264 = tpu.matmul %263, %248, %cst_82 {dimension_numbers = #tpu.dot_dimension_numbers<[2], [1], [1], [2], [0, 0, 0, 1, 1, 2], [0], [0]>} : vector<2x8x8xf32>, vector<2x8x8xf32>, vector<2x8x8xf32> -> vector<2x8x8xf32>
    "tpu.trace_stop"() : () -> ()
    %265 = vector.shape_cast %264 : vector<2x8x8xf32> to vector<16x8xf32>
    %266 = vector.extract_strided_slice %170 {offsets = [24, 0], sizes = [8, 32], strides = [1, 1]} : vector<32x32xf32> to vector<8x32xf32>
    %cst_83 = arith.constant dense<0.000000e+00> : vector<16x32xf32>
    %267 = tpu.matmul %265, %266, %cst_83 {dimension_numbers = #tpu.dot_dimension_numbers<[1], [0], [0], [1], [0, 0, 1, 1], [], []>} : vector<16x8xf32>, vector<8x32xf32>, vector<16x32xf32> -> vector<16x32xf32>
    %268 = arith.addf %245, %267 : vector<16x32xf32>
    %269 = vector.broadcast %171 : vector<1x32xf32> to vector<16x32xf32>
    %270 = arith.addf %268, %269 : vector<16x32xf32>
    %271 = arith.addf %135, %270 : vector<16x32xf32>
    %c4 = arith.constant 4 : index
    %272 = memref.load %arg0[%c4] : memref<6xf32, #tpu.memory_space<smem>>
    %c5 = arith.constant 5 : index
    %273 = memref.load %arg0[%c5] : memref<6xf32, #tpu.memory_space<smem>>
    %cst_84 = arith.constant dense<0.000000e+00> : vector<16xf32>
    %274 = vector.multi_reduction <add>, %271, %cst_84 [1] : vector<16x32xf32> to vector<16xf32>
    %275 = vector.shape_cast %274 : vector<16xf32> to vector<16x1xf32>
    %cst_85 = arith.constant 3.200000e+01 : f32
    %276 = vector.broadcast %cst_85 : f32 to vector<16x1xf32>
    %277 = arith.divf %275, %276 : vector<16x1xf32>
    %278 = vector.broadcast %277 : vector<16x1xf32> to vector<16x32xf32>
    %279 = arith.subf %271, %278 : vector<16x32xf32>
    %280 = arith.mulf %279, %279 : vector<16x32xf32>
    %cst_86 = arith.constant dense<0.000000e+00> : vector<16xf32>
    %281 = vector.multi_reduction <add>, %280, %cst_86 [1] : vector<16x32xf32> to vector<16xf32>
    %282 = vector.shape_cast %281 : vector<16xf32> to vector<16x1xf32>
    %cst_87 = arith.constant 0.0322580636 : f32
    %283 = vector.broadcast %cst_87 : f32 to vector<16x1xf32>
    %284 = arith.mulf %282, %283 : vector<16x1xf32>
    %285 = vector.broadcast %277 : vector<16x1xf32> to vector<16x32xf32>
    %286 = arith.subf %271, %285 : vector<16x32xf32>
    %287 = vector.broadcast %272 : f32 to vector<16x32xf32>
    %288 = arith.mulf %287, %286 : vector<16x32xf32>
    %289 = math.sqrt %284 : vector<16x1xf32>
    %cst_88 = arith.constant 9.99999997E-7 : f32
    %290 = vector.broadcast %cst_88 : f32 to vector<16x1xf32>
    %291 = arith.addf %289, %290 : vector<16x1xf32>
    %292 = vector.broadcast %291 : vector<16x1xf32> to vector<16x32xf32>
    %293 = arith.divf %288, %292 : vector<16x32xf32>
    %294 = vector.broadcast %273 : f32 to vector<16x32xf32>
    %295 = arith.addf %293, %294 : vector<16x32xf32>
    %c0_89 = arith.constant 0 : index
    %c640 = arith.constant 640 : index
    %296 = vector.load %arg5[%c0_89, %c640] : memref<32x768xf32, #tpu.memory_space<vmem>>, vector<32x32xf32>
    %c0_90 = arith.constant 0 : index
    %c640_91 = arith.constant 640 : index
    %297 = vector.load %arg6[%c0_90, %c640_91] : memref<1x768xf32, #tpu.memory_space<vmem>>, vector<1x32xf32>
    %cst_92 = arith.constant dense<0.000000e+00> : vector<16x32xf32>
    %298 = tpu.matmul %295, %296, %cst_92 {dimension_numbers = #tpu.dot_dimension_numbers<[1], [0], [0], [1], [0, 0, 1, 1], [], []>} : vector<16x32xf32>, vector<32x32xf32>, vector<16x32xf32> -> vector<16x32xf32>
    %299 = vector.broadcast %297 : vector<1x32xf32> to vector<16x32xf32>
    %300 = arith.addf %298, %299 : vector<16x32xf32>
    %cst_93 = arith.constant 0.000000e+00 : f32
    %301 = vector.broadcast %cst_93 : f32 to vector<16x32xf32>
    %302 = arith.maximumf %300, %301 : vector<16x32xf32>
    %cst_94 = arith.constant dense<0.000000e+00> : vector<16x32xf32>
    %303 = tpu.matmul %302, %296, %cst_94 {dimension_numbers = #tpu.dot_dimension_numbers<[1], [0], [0], [1], [0, 0, 1, 1], [], []>} : vector<16x32xf32>, vector<32x32xf32>, vector<16x32xf32> -> vector<16x32xf32>
    %304 = arith.addf %271, %303 : vector<16x32xf32>
    %305 = vector.broadcast %297 : vector<1x32xf32> to vector<16x32xf32>
    %306 = arith.addf %304, %305 : vector<16x32xf32>
    %c0_95 = arith.constant 0 : index
    %c0_96 = arith.constant 0 : index
    %307 = vector.load %arg7[%c0_95, %c0_96] : memref<16x32xf32, #tpu.memory_space<vmem>>, vector<16x32xf32>
    tpu.vector_store %arg7[%c0_95, %c0_96], %306 {strides = array<i32>} : memref<16x32xf32, #tpu.memory_space<vmem>>, vector<16x32xf32>,
    return
  }
}

</mosaic_0001>

<bundles_post_ra>
// kernel: tpu_custom_call.1
= control target key start
LH: loop header
LB: loop body
LE: loop exit
PB: predicated region body
PF: predicated region fallthrough
CT: control target
= control target key end

     0   :  { %12 = vsyncpa [#allocation5], 0  ;;  %s2748_s0 = inlined_call_operand.hbm [shape: f32[6], index: 0, kind: input, shape index: {}]   ;;  %s2749_s1 = inlined_call_operand.hbm [shape: f32[16,32], index: 1, kind: input, shape index: {}]   ;;  %s2750_s2 = inlined_call_operand.hbm [shape: f32[16,32], index: 2, kind: input, shape index: {}]   ;;  %s2751_s3 = inlined_call_operand.hbm [shape: f32[8,8], index: 3, kind: input, shape index: {}]   ;;  %s2752_s4 = inlined_call_operand.hbm [shape: f32[8,8], index: 4, kind: input, shape index: {}]   ;;  %s2753_s5 = inlined_call_operand.hbm [shape: f32[32,768], index: 5, kind: input, shape index: {}]   ;;  %s2754_s6 = inlined_call_operand.hbm [shape: f32[1,768], index: 6, kind: input, shape index: {}]   ;;  %s2755_s7 = inlined_call_operand.hbm [shape: f32[16,32], index: 7, kind: output, shape index: {}]  }
   0x1   :  { %13 = vsyncpa [#allocation3], 0 }
   0x2   :  { %14 = vsyncpa [#allocation8], 0 }
   0x3   :  { %15 = vsyncpa [#allocation11], 0 }
   0x4   :  { %16 = vsyncpa [#allocation14], 0 }
   0x5   :  { %17 = vsyncpa [#allocation4], 0  ;;  %s44_s26 = sshll.u32 %s2750_s2, 4  ;;  %s2323_s27 = smov [#allocation7]   ;;  %s45_s26 = int_to_ptr.hbm [resolvable:$true] %s44_s26 }
   0x6   :  { %s46_s28 = sshll.u32 %s2323_s27, 4  ;;  %s69_s8 = sshll.u32 %s2752_s4, 4  ;;  %s47_s28 = int_to_ptr.vmem [resolvable:$true] %s46_s28  ;;  %s70_s8 = int_to_ptr.hbm [resolvable:$true] %s69_s8 }
   0x7   :  { %s2324_s9 = smov 128   ;;  %s2325_s10 = smov 8  }
   0x8   :  { %52 = dma.hbm_to_vmem [thread:$0]  %s45_s26, 256, %s47_s28, [#allocation8], %s2324_s9, %s2324_s9, %s2325_s10  }
   0x9   :  { %s2326_s11 = smov [#allocation10]   ;;  %s23_s2 = sshll.u32 %s2748_s0, 4  ;;  %s24_s2 = int_to_ptr.hbm [resolvable:$true] %s23_s2 }
   0xa   :  { %s71_s12 = sshll.u32 %s2326_s11, 4  ;;  %s31_s4 = sshll.u32 %s2749_s1, 4  ;;  %s72_s12 = int_to_ptr.vmem [resolvable:$true] %s71_s12  ;;  %s32_s4 = int_to_ptr.hbm [resolvable:$true] %s31_s4 }
   0xb   :  { %74 = dma.hbm_to_vmem [thread:$0]  %s70_s8, 128, %s72_s12, [#allocation11]  }
   0xc   :  { %s2327_s17 = smov [#allocation2]   ;;  %s2328_s18 = smov [#allocation6]  }
   0xd   :  { %26 = dma.hbm_to_smem %s24_s2, 16, %s2327_s17, [#allocation5]  }
   0xe   :  { %s33_s19 = sshll.u32 %s2328_s18, 4  ;;  %s58_s22 = sshll.u32 %s2751_s3, 4  ;;  %s34_s19 = int_to_ptr.vmem [resolvable:$true] %s33_s19  ;;  %s59_s22 = int_to_ptr.hbm [resolvable:$true] %s58_s22 }
   0xf   :  { %39 = dma.hbm_to_vmem [thread:$0]  %s32_s4, 256, %s34_s19, [#allocation3], %s2324_s9, %s2324_s9, %s2325_s10  }
  0x10   :  { %s79_s24 = sshll.u32 %s2753_s5, 4  ;;  %s2329_s1 = smov [#allocation9]   ;;  %s80_s24 = int_to_ptr.hbm [resolvable:$true] %s79_s24 }
  0x11   :  { %s60_s25 = sshll.u32 %s2329_s1, 4  ;;  %s2330_s26 = smov [#allocation12]   ;;  %s61_s25 = int_to_ptr.vmem [resolvable:$true] %s60_s25 }
  0x12   :  { %63 = dma.hbm_to_vmem [thread:$0]  %s59_s22, 128, %s61_s25, [#allocation8]  }
  0x13   :  { %s81_s27 = sshll.u32 %s2330_s26, 4  ;;  %s2331_s28 = smov 768   ;;  %s82_s27 = int_to_ptr.vmem [resolvable:$true] %s81_s27 }
  0x14   :  { %s2332_s3 = smov 48   ;;  %s93_s8 = sshll.u32 %s2754_s6, 4  ;;  %s94_s8 = int_to_ptr.hbm [resolvable:$true] %s93_s8 }
  0x15   :  { %87 = dma.hbm_to_vmem [thread:$0]  %s80_s24, 3072, %s82_s27, [#allocation11], %s2331_s28, %s2331_s28, %s2332_s3  }
  0x16   :  { %s2333_s11 = smov [#allocation13]  }
  0x17   :  { %s95_s12 = sshll.u32 %s2333_s11, 4  ;;  %s96_s12 = int_to_ptr.vmem [resolvable:$true] %s95_s12 }
  0x18   :  { %98 = dma.hbm_to_vmem [thread:$0]  %s94_s8, 96, %s96_s12, [#allocation14]  }
  0x19   :  { %2311 = dma.done.wait [#allocation5], 16  }
  0x1a   :  { %2312 = vsyncadd [#allocation5], 4294967280 }
  0x1b   :  { %2313 = dma.done.wait [#allocation3], 256  }
  0x1c   :  { %2314 = vsyncadd [#allocation3], 4294967040 }
  0x1d   :  { %2315 = dma.done.wait [#allocation8], 384  }
  0x1e   :  { %2316 = vsyncadd [#allocation8], 4294966912 }
  0x1f   :  { %2317 = dma.done.wait [#allocation11], 3200  }
  0x20   :  { %2318 = vsyncadd [#allocation11], 4294964096 }
  0x21   :  { %2319 = dma.done.wait [#allocation14], 96  }
  0x22   :  { %2320 = vsyncadd [#allocation14], 4294967200 }
  0x23   :  { %127 = sfence }
  0x24   :  { %v2414_v0 = vld [vmem:[#allocation6] sm:$0xff]  ;;  %vm136_vm0 = vcmask 261120   ;;  %v2418_v2 = vld [vmem:[#allocation6 + $0x8] sm:$0xff]  ;;  %v2334_v4 = vmov 32.0   ;;  %v228_v22 = vld [vmem:[#allocation12 + $0x60] sm:$0xff]  ;;  %s2438_s5 = sld [smem:[#allocation2]] }
  0x25   :  { %v137_v1 = vsel %vm136_vm0, %v2414_v0, 0.0  ;;  %v140_v3 = vsel %vm136_vm0, %v2418_v2, 0.0  ;;  %2041 = vrcp.f32 %v2334_v4  ;;  %v229_v21 = vld [vmem:[#allocation12 + $0x90] sm:$0xff]  ;;  %v226_v25 = vld [vmem:[#allocation12] sm:$0xff]  ;;  %s2440_s6 = sld [smem:[#allocation2 + $0x1]]  ;;  %s2335_s13 = smov 88  }
  0x26   :  { %138 = vadd.xlane.f32.xlu0 %v137_v1  ;;  %252 = vmatpush.msra.mxu0 %v229_v21  ;;  %v227_v23 = vld [vmem:[#allocation12 + $0x30] sm:$0xff]  ;;  %s2336_s14 = smov 96   ;;  %s2337_s2 = smov 120   ;;  %vm271_vm14 = vcmask 64512  }
  0x27   :  { %s2338_s15 = smov 64   ;;  %s2339_s16 = smov 112  }
  0x28   :  { %253 = vmatpush.msra.mxu0 %v228_v22  ;;  %s2340_s4 = smov 56   ;;  %s2341_s17 = smov 80  }
  0x29   :  { %s2342_s18 = smov 72   ;;  %s2343_s19 = smov 104  }
  0x2a   :  { %254 = vmatpush.msra.mxu0 %v227_v23  ;;  %v164_v57 = vstv %s2438_s5  ;;  %s2344_s20 = smov 40   ;;  %s2574_s21 = sld [smem:[#allocation2 + $0x2]] }
  0x2b   :  { %v2042_v5 = vpop.eup %2041  ;;  %s2576_s22 = sld [smem:[#allocation2 + $0x3]]  ;;  %s2345_s24 = smov [#allocation15]  }
  0x2c   :  { %v144_v6 = vmul.f32 32.0, %v2042_v5  ;;  %vm148_vm1 = vweird.f32 %v2042_v5  ;;  %255 = vmatpush.msra.mxu0 %v226_v25  ;;  %s2726_s0 = sld [smem:[#allocation2 + $0x4]]  ;;  %s1914_s1 = sshll.u32 %s2345_s24, 4  ;;  %s1915_s1 = int_to_ptr.vmem [resolvable:$true] %s1914_s1 }
  0x2d   :  { %s2728_s23 = sld [smem:[#allocation2 + $0x5]]  ;;  %s1916_s27 = sshll.u32 %s2755_s7, 4  ;;  %s1917_s27 = int_to_ptr.hbm [resolvable:$true] %s1916_s27 }
  0x2e   :  { %141 = vadd.xlane.f32.xlu0 %v140_v3  ;;  %v145_v7 = vsub.f32 1.0, %v144_v6  ;;  %v223_v3 = vstv %s2440_s6 }
  0x30   :  { %v146_v8 = vmul.f32 %v2042_v5, %v145_v7 }
  0x32   :  { %v147_v9 = vadd.f32 %v2042_v5, %v146_v8 }
  0x34   :  { %v2422_v10 = vsel %vm148_vm1, %v2042_v5, %v147_v9 }
  0x99   :  { %v139_v11 = vpop.xlane.xlu0 %138 }
  0x9a   :  { %v150_v12 = vmul.f32 %v2422_v10, %v139_v11 }
  0x9c   :  { %v2426_v13 = vsub.f32 %v2414_v0, %v150_v12 }
  0x9e   :  { %v154_v14 = vmul.f32 %v2426_v13, %v2426_v13  ;;  %v165_v61 = vmul.f32 %v164_v57, %v2426_v13 }
  0xa0   :  { %v156_v15 = vsel %vm136_vm0, %v154_v14, 0.0 }
  0xa1   :  { %157 = vadd.xlane.f32.xlu1 %v156_v15  ;;  %v142_v16 = vpop.xlane.xlu0 %141 }
  0xa2   :  { %v151_v17 = vmul.f32 %v2422_v10, %v142_v16 }
  0xa4   :  { %v2433_v18 = vsub.f32 %v2418_v2, %v151_v17 }
  0xa6   :  { %v155_v19 = vmul.f32 %v2433_v18, %v2433_v18  ;;  %v166_v13 = vmul.f32 %v164_v57, %v2433_v18 }
  0xa8   :  { %v159_v20 = vsel %vm136_vm0, %v155_v19, 0.0  ;;  %v2035_v19 = vld [vmem:[#allocation13] ss:$0 sm:$0xff] }
  0xa9   :  { %160 = vadd.xlane.f32.xlu1 %v159_v20 }
 0x114   :  { %v158_v24 = vpop.xlane.xlu1 %157 }
 0x115   :  { %v162_v26 = vmul.f32 0.032258064, %v158_v24 }
 0x117   :  { %2043 = vrsqrt.f32 %v162_v26  ;;  %vm174_vm2 = vcmp.eq.f32.partialorder %v162_v26, inf  ;;  %v177_v39 = vand.u32 2147483648, %v162_v26  ;;  %vm176_vm3 = vcmp.eq.f32.partialorder %v162_v26, 0.0 }
 0x11c   :  { %v161_v27 = vpop.xlane.xlu1 %160 }
 0x11d   :  { %v2044_v28 = vpop.eup %2043  ;;  %v163_v29 = vmul.f32 0.032258064, %v161_v27 }
 0x11e   :  { %v168_v30 = vmul.f32 %v2044_v28, %v162_v26 }
 0x11f   :  { %2045 = vrsqrt.f32 %v163_v29  ;;  %vm186_vm4 = vcmp.eq.f32.partialorder %v163_v29, inf  ;;  %v189_v47 = vand.u32 2147483648, %v163_v29  ;;  %vm188_vm5 = vcmp.eq.f32.partialorder %v163_v29, 0.0 }
 0x120   :  { %v169_v31 = vmul.f32 %v2044_v28, %v168_v30  ;;  %v2474_v30 = vld [vmem:[#allocation9] sm:$0xff] }
 0x122   :  { %v170_v32 = vmul.f32 0.5, %v169_v31 }
 0x124   :  { %v171_v33 = vsub.f32 1.5, %v170_v32 }
 0x125   :  { %v2046_v34 = vpop.eup %2045 }
 0x126   :  { %v172_v35 = vmul.f32 %v2044_v28, %v171_v33  ;;  %v180_v36 = vmul.f32 %v2046_v34, %v163_v29 }
 0x128   :  { %v173_v37 = vmul.f32 %v172_v35, %v162_v26  ;;  %v181_v38 = vmul.f32 %v2046_v34, %v180_v36 }
 0x12a   :  { %v182_v40 = vmul.f32 0.5, %v181_v38  ;;  %v175_v41 = vsel %vm174_vm2, %v162_v26, %v173_v37 }
 0x12b   :  { %v178_v42 = vsel %vm176_vm3, %v177_v39, %v175_v41 }
 0x12c   :  { %v183_v43 = vsub.f32 1.5, %v182_v40  ;;  %v191_v44 = vadd.f32 1e-06, %v178_v42 }
 0x12e   :  { %v184_v45 = vmul.f32 %v2046_v34, %v183_v43  ;;  %2047 = vrcp.f32 %v191_v44  ;;  %v204_v54 = vand.u32 2147483648, %v191_v44  ;;  %v202_v56 = vand.u32 2147483647, %v191_v44 }
 0x12f   :  { %vm198_vm7 = vweird.f32 %v191_v44 }
 0x130   :  { %v185_v46 = vmul.f32 %v184_v45, %v163_v29  ;;  %v205_v60 = vor.u32 1.1754944e-38, %v204_v54  ;;  %vm203_vm9 = vcmp.eq.f32.partialorder %v202_v56, 8.507059e+37 }
 0x132   :  { %v187_v48 = vsel %vm186_vm4, %v163_v29, %v185_v46 }
 0x133   :  { %v190_v49 = vsel %vm188_vm5, %v189_v47, %v187_v48 }
 0x134   :  { %v2048_v50 = vpop.eup %2047  ;;  %v192_v51 = vadd.f32 1e-06, %v190_v49 }
 0x135   :  { %v194_v52 = vmul.f32 %v2048_v50, %v191_v44  ;;  %vm199_vm6 = vweird.f32 %v2048_v50 }
 0x136   :  { %2049 = vrcp.f32 %v192_v51  ;;  %vm200_vm8 = vmor %vm198_vm7, %vm199_vm6  ;;  %v219_v6 = vand.u32 2147483648, %v192_v51  ;;  %v217_v9 = vand.u32 2147483647, %v192_v51  ;;  %vm213_vm11 = vweird.f32 %v192_v51 }
 0x137   :  { %v195_v53 = vsub.f32 1.0, %v194_v52 }
 0x138   :  { %v220_v12 = vor.u32 1.1754944e-38, %v219_v6  ;;  %vm218_vm13 = vcmp.eq.f32.partialorder %v217_v9, 8.507059e+37 }
 0x139   :  { %v196_v55 = vmul.f32 %v2048_v50, %v195_v53 }
 0x13b   :  { %v197_v58 = vadd.f32 %v2048_v50, %v196_v55 }
 0x13c   :  { %v2050_v59 = vpop.eup %2049 }
 0x13d   :  { %v201_v62 = vsel %vm200_vm8, %v2048_v50, %v197_v58  ;;  %v209_v63 = vmul.f32 %v2050_v59, %v192_v51  ;;  %vm214_vm10 = vweird.f32 %v2050_v59  ;;  %v263_v58 = vld [vmem:[#allocation12 + $0x8] sm:$0xff] }
 0x13e   :  { %v206_v1 = vsel %vm203_vm9, %v205_v60, %v201_v62  ;;  %vm215_vm12 = vmor %vm213_vm11, %vm214_vm10 }
 0x13f   :  { %v207_v4 = vmul.f32 %v206_v1, %v165_v61  ;;  %v210_v5 = vsub.f32 1.0, %v209_v63 }
 0x141   :  { %v224_v7 = vadd.f32 %v223_v3, %v207_v4  ;;  %v211_v8 = vmul.f32 %v2050_v59, %v210_v5 }
 0x143   :  { %1934 = vmatmul.msk.f32.vlgmr.msra.gmra.mxu0 %vm136_vm0, %v224_v7  ;;  %v212_v11 = vadd.f32 %v2050_v59, %v211_v8 }
 0x145   :  { %v216_v14 = vsel %vm215_vm12, %v2050_v59, %v212_v11 }
 0x146   :  { %v221_v15 = vsel %vm218_vm13, %v220_v12, %v216_v14 }
 0x147   :  { %v222_v16 = vmul.f32 %v221_v15, %v166_v13 }
 0x149   :  { %v225_v17 = vadd.f32 %v223_v3, %v222_v16 }
 0x14b   :  { %1935 = vmatmul.msk.f32.gmra.mxu0 %vm136_vm0, %v225_v17 }
 0x1c0   :  { %v257_v20 = vpop.f32.mrf.mxu0 }
 0x1c1   :  { %v2448_v21 = vadd.f32 %v2035_v19, %v257_v20 }
 0x1c3   :  { %403 = vrot.lane.b32.xlu0 %v2448_v21, %s2335_s13  ;;  %269 = vrot.lane.b32.xlu2 %v2448_v21, %s2336_s14 }
 0x1c4   :  { %401 = vrot.lane.b32.xlu1 %v2448_v21, %s2337_s2 }
 0x1c8   :  { %v260_v18 = vpop.f32.mrf.mxu0 }
 0x1c9   :  { %v2456_v22 = vadd.f32 %v2035_v19, %v260_v18 }
 0x1cb   :  { %297 = vrot.lane.b32.xlu2 %v2456_v22, %s2336_s14 }
 0x1d3   :  { %431 = vrot.lane.b32.xlu2 %v2456_v22, %s2335_s13 }
 0x1db   :  { %429 = vrot.lane.b32.xlu2 %v2456_v22, %s2337_s2 }
 0x21d   :  { %v270_v23 = vpop.permute.xlu2 %269 }
 0x21e   :  { %1936 = vmatpush.xpose.msk.msrb.mxu0 %vm271_vm14, %v270_v23 }
 0x221   :  { %1937 = vmatmul.msk.f32.vlgmr.msrb.gmra.mxu0 %vm271_vm14, %v2448_v21 }
 0x222   :  { %585 = vmatpush.msra.mxu0 %v263_v58 }
 0x225   :  { %v298_v24 = vpop.permute.xlu2 %297 }
 0x226   :  { %1938 = vmatpush.xpose.msk.msra.mxu2 %vm271_vm14, %v298_v24 }
 0x229   :  { %1939 = vmatmul.msk.f32.vlgmr.msra.gmra.mxu2 %vm271_vm14, %v2456_v22 }
 0x22d   :  { %v432_v25 = vpop.permute.xlu2 %431 }
 0x22e   :  { %1944 = vmatpush.xpose.msk.msrb.mxu2 %vm271_vm14, %v432_v25 }
 0x235   :  { %v430_v26 = vpop.permute.xlu2 %429  ;;  %v404_v27 = vpop.permute.xlu0 %403 }
 0x236   :  { %1942 = vmatpush.xpose.msk.msra.mxu1 %vm271_vm14, %v404_v27  ;;  %1945 = vmatmul.msk.f32.vlgmr.msrb.gmra.mxu2 %vm271_vm14, %v430_v26  ;;  %v402_v28 = vpop.permute.xlu1 %401 }
 0x239   :  { %1943 = vmatmul.msk.f32.vlgmr.msra.gmra.mxu1 %vm271_vm14, %v402_v28 }
 0x29e   :  { %v293_v29 = vpop.f32.mrf.mxu0 }
 0x29f   :  { %v323_v31 = vmul.f32 0.35355338, %v293_v29  ;;  %v264_v29 = vld [vmem:[#allocation12 + $0x38] sm:$0xff] }
 0x2a0   :  { %556 = vmatpush.msra.mxu2 %v264_v29  ;;  %v266_v29 = vld [vmem:[#allocation12 + $0x98] sm:$0xff] }
 0x2a1   :  { %v325_v32 = vadd.f32 %v323_v31, %v2474_v30 }
 0x2a3   :  { %v327_v33 = vsel %vm271_vm14, %v325_v32, -inf }
 0x2a4   :  { %328 = vmax.xlane.f32.xlu2 %v327_v33 }
 0x2ac   :  { %v320_v34 = vpop.f32.mrf.mxu2 }
 0x2ad   :  { %v324_v35 = vmul.f32 0.35355338, %v320_v34 }
 0x2af   :  { %v326_v36 = vadd.f32 %v324_v35, %v2474_v30 }
 0x2b1   :  { %v330_v37 = vsel %vm271_vm14, %v326_v36, -inf }
 0x2b2   :  { %331 = vmax.xlane.f32.xlu0 %v330_v37 }
 0x2b6   :  { %v426_v38 = vpop.f32.mrf.mxu1 }
 0x2b7   :  { %v457_v39 = vmul.f32 0.35355338, %v426_v38 }
 0x2b9   :  { %v459_v40 = vadd.f32 %v457_v39, %v2474_v30  ;;  %v454_v62 = vpop.f32.mrf.mxu2 }
 0x2ba   :  { %v458_v63 = vmul.f32 0.35355338, %v454_v62 }
 0x2bb   :  { %v461_v41 = vsel %vm271_vm14, %v459_v40, -inf }
 0x2bc   :  { %462 = vmax.xlane.f32.xlu1 %v461_v41  ;;  %v460_v3 = vadd.f32 %v458_v63, %v2474_v30 }
 0x2be   :  { %v464_v4 = vsel %vm271_vm14, %v460_v3, -inf }
 0x2d5   :  { %375 = vrot.lane.b32.xlu1 %v2456_v22, %s2338_s15 }
 0x2dd   :  { %593 = vrot.lane.b32.xlu1 %v2448_v21, %s2339_s16 }
 0x2e5   :  { %509 = vrot.lane.b32.xlu1 %v2456_v22, %s2340_s4 }
 0x2ed   :  { %623 = vrot.lane.b32.xlu1 %v2456_v22, %s2341_s17 }
 0x2f5   :  { %621 = vrot.lane.b32.xlu1 %v2456_v22, %s2339_s16 }
 0x2fd   :  { %760 = vrot.lane.b32.xlu1 %v2448_v21, %s2342_s18 }
 0x305   :  { %758 = vrot.lane.b32.xlu1 %v2448_v21, %s2343_s19 }
 0x30d   :  { %675 = vrot.lane.b32.xlu1 %v2448_v21, %s2332_s3 }
 0x317   :  { %v329_v42 = vpop.xlane.xlu2 %328 }
 0x318   :  { %v333_v43 = vsub.f32 %v325_v32, %v329_v42 }
 0x31a   :  { %v335_v44 = vmul.f32 1.442695, %v333_v43 }
 0x31c   :  { %2051 = vpow2.f32 %v335_v44 }
 0x322   :  { %v2052_v45 = vpop.eup %2051 }
 0x323   :  { %v339_v46 = vsel %vm271_vm14, %v2052_v45, 0.0 }
 0x324   :  { %340 = vadd.xlane.f32.xlu2 %v339_v46 }
 0x325   :  { %v332_v47 = vpop.xlane.xlu0 %331 }
 0x326   :  { %v334_v48 = vsub.f32 %v326_v36, %v332_v47 }
 0x328   :  { %v337_v49 = vmul.f32 1.442695, %v334_v48 }
 0x32a   :  { %2053 = vpow2.f32 %v337_v49 }
 0x32f   :  { %v463_v50 = vpop.xlane.xlu1 %462 }
 0x330   :  { %v2054_v51 = vpop.eup %2053  ;;  %v467_v52 = vsub.f32 %v459_v40, %v463_v50 }
 0x331   :  { %v342_v53 = vsel %vm271_vm14, %v2054_v51, 0.0 }
 0x332   :  { %v469_v54 = vmul.f32 1.442695, %v467_v52  ;;  %343 = vadd.xlane.f32.xlu0 %v342_v53 }
 0x334   :  { %2055 = vpow2.f32 %v469_v54 }
 0x33a   :  { %v2056_v55 = vpop.eup %2055 }
 0x33b   :  { %v473_v56 = vsel %vm271_vm14, %v2056_v55, 0.0 }
 0x33c   :  { %349 = vrot.lane.b32.xlu2 %v2448_v21, %s2338_s15  ;;  %474 = vadd.xlane.f32.xlu0 %v473_v56 }
 0x344   :  { %595 = vrot.lane.b32.xlu2 %v2448_v21, %s2341_s17 }
 0x347   :  { %v376_v57 = vpop.permute.xlu1 %375 }
 0x34f   :  { %v594_v59 = vpop.permute.xlu1 %593 }
 0x350   :  { %483 = vrot.lane.b32.xlu0 %v2448_v21, %s2340_s4 }
 0x357   :  { %v510_v60 = vpop.permute.xlu1 %509 }
 0x358   :  { %530 = vmatpush.msrb.mxu1 %v510_v60 }
 0x35f   :  { %v624_v61 = vpop.permute.xlu1 %623 }
 0x360   :  { %1954 = vmatpush.xpose.msk.msra.mxu1 %vm271_vm14, %v624_v61 }
 0x367   :  { %v622_v1 = vpop.permute.xlu1 %621 }
 0x36d   :  { %465 = vmax.xlane.f32.xlu2 %v464_v4 }
 0x36f   :  { %v761_v5 = vpop.permute.xlu1 %760 }
 0x370   :  { %1960 = vmatpush.xpose.msk.msrb.mxu0 %vm271_vm14, %v761_v5 }
 0x377   :  { %v759_v15 = vpop.permute.xlu1 %758 }
 0x37f   :  { %v676_v18 = vpop.permute.xlu1 %675 }
 0x397   :  { %v341_v6 = vpop.xlane.xlu2 %340 }
 0x398   :  { %2057 = vrcp.f32 %v341_v6 }
 0x39e   :  { %v2058_v7 = vpop.eup %2057 }
 0x39f   :  { %v350_v8 = vpop.permute.xlu2 %349  ;;  %v347_v9 = vmul.f32 %v2058_v7, %v2052_v45 }
 0x3a0   :  { %370 = vmatpush.msra.mxu3 %v350_v8  ;;  %v265_v8 = vld [vmem:[#allocation12 + $0x68] sm:$0xff] }
 0x3a1   :  { %1940 = vmatmul.msk.f32.vlgmr.msra.gmra.mxu3 %vm271_vm14, %v347_v9  ;;  %748 = vmatpush.msrb.mxu2 %v265_v8 }
 0x3a2   :  { %396 = vmatpush.msrb.mxu3 %v376_v57 }
 0x3a5   :  { %v344_v11 = vpop.xlane.xlu0 %343 }
 0x3a6   :  { %2059 = vrcp.f32 %v344_v11 }
 0x3a7   :  { %v596_v20 = vpop.permute.xlu2 %595 }
 0x3ac   :  { %v2060_v12 = vpop.eup %2059 }
 0x3ad   :  { %v348_v13 = vmul.f32 %v2060_v12, %v2054_v51 }
 0x3af   :  { %1941 = vmatmul.msk.f32.vlgmr.msrb.gmra.mxu3 %vm271_vm14, %v348_v13  ;;  %v475_v14 = vpop.xlane.xlu0 %474 }
 0x3b0   :  { %2061 = vrcp.f32 %v475_v14 }
 0x3b6   :  { %v2062_v16 = vpop.eup %2061 }
 0x3b7   :  { %v481_v17 = vmul.f32 %v2062_v16, %v2056_v55 }
 0x3c2   :  { %v484_v19 = vpop.permute.xlu0 %483 }
 0x3c3   :  { %504 = vmatpush.msra.mxu3 %v484_v19 }
 0x3c4   :  { %1946 = vmatmul.msk.f32.vlgmr.msra.gmra.mxu3 %vm271_vm14, %v481_v17 }
 0x3c5   :  { %1952 = vmatpush.xpose.msk.msrb.mxu3 %vm271_vm14, %v596_v20 }
 0x3c9   :  { %696 = vmatpush.msra.mxu3 %v676_v18 }
 0x3cc   :  { %1953 = vmatmul.msk.f32.vlgmr.msrb.gmra.mxu3 %vm271_vm14, %v594_v59 }
 0x3e0   :  { %v466_v23 = vpop.xlane.xlu2 %465 }
 0x3e1   :  { %v468_v24 = vsub.f32 %v460_v3, %v466_v23 }
 0x3e3   :  { %v471_v25 = vmul.f32 1.442695, %v468_v24 }
 0x3e5   :  { %2063 = vpow2.f32 %v471_v25 }
 0x3eb   :  { %v2064_v26 = vpop.eup %2063 }
 0x3ec   :  { %v476_v27 = vsel %vm271_vm14, %v2064_v26, 0.0 }
 0x3ed   :  { %477 = vadd.xlane.f32.xlu0 %v476_v27 }
 0x424   :  { %v372_v28 = vpop.f32.mrf.mxu3 }
 0x425   :  { %1950 = vmatmul.msk.f32.vlgmr.msra.gmra.mxu0 %vm271_vm14, %v372_v28 }
 0x432   :  { %v398_v31 = vpop.f32.mrf.mxu3 }
 0x433   :  { %1951 = vmatmul.msk.f32.gmra.mxu0 %vm271_vm14, %v398_v31 }
 0x43b   :  { %1961 = vmatmul.msk.f32.vlgmr.msrb.gmra.mxu0 %vm271_vm14, %v759_v15 }
 0x447   :  { %v506_v32 = vpop.f32.mrf.mxu3 }
 0x448   :  { %1948 = vmatmul.msk.f32.vlgmr.msra.gmra.mxu2 %vm271_vm14, %v506_v32 }
 0x44f   :  { %v618_v33 = vpop.f32.mrf.mxu3 }
 0x450   :  { %v649_v34 = vmul.f32 0.35355338, %v618_v33 }
 0x452   :  { %v651_v35 = vadd.f32 %v649_v34, %v2474_v30 }
 0x454   :  { %v653_v36 = vsel %vm271_vm14, %v651_v35, -inf }
 0x455   :  { %654 = vmax.xlane.f32.xlu2 %v653_v36 }
 0x460   :  { %v478_v37 = vpop.xlane.xlu0 %477 }
 0x461   :  { %2065 = vrcp.f32 %v478_v37 }
 0x467   :  { %v2066_v38 = vpop.eup %2065 }
 0x468   :  { %v482_v39 = vmul.f32 %v2066_v38, %v2064_v26 }
 0x46a   :  { %1947 = vmatmul.msk.f32.vlgmr.msrb.gmra.mxu1 %vm271_vm14, %v482_v39 }
 0x46d   :  { %788 = vrot.lane.b32.xlu2 %v2456_v22, %s2342_s18 }
 0x472   :  { %1955 = vmatmul.msk.f32.vlgmr.msra.gmra.mxu1 %vm271_vm14, %v622_v1 }
 0x4a2   :  { %v2534_v51 = vpop.f32.mrf.mxu0 }
 0x4b0   :  { %v2536_v52 = vpop.f32.mrf.mxu0 }
 0x4b8   :  { %v783_v53 = vpop.f32.mrf.mxu0 }
 0x4b9   :  { %v814_v54 = vmul.f32 0.35355338, %v783_v53 }
 0x4bb   :  { %v816_v55 = vadd.f32 %v814_v54, %v2474_v30 }
 0x4bd   :  { %v818_v56 = vsel %vm271_vm14, %v816_v55, -inf }
 0x4c8   :  { %v655_v40 = vpop.xlane.xlu2 %654 }
 0x4c9   :  { %v659_v41 = vsub.f32 %v651_v35, %v655_v40 }
 0x4cb   :  { %v661_v42 = vmul.f32 1.442695, %v659_v41  ;;  %v558_v36 = vpop.f32.mrf.mxu2  ;;  %v2036_v41 = vld [vmem:[#allocation13 + $0x1] ss:$0 sm:$0xff] }
 0x4cc   :  { %v588_v39 = vadd.f32 %v2534_v51, %v558_v36 }
 0x4cd   :  { %2067 = vpow2.f32 %v661_v42 }
 0x4d0   :  { %v789_v43 = vpop.permute.xlu2 %788 }
 0x4d1   :  { %1962 = vmatpush.xpose.msk.msrb.mxu3 %vm271_vm14, %v789_v43 }
 0x4d3   :  { %v2068_v44 = vpop.eup %2067 }
 0x4d4   :  { %v665_v45 = vsel %vm271_vm14, %v2068_v44, 0.0 }
 0x4d5   :  { %666 = vadd.xlane.f32.xlu0 %v665_v45 }
 0x4e7   :  { %v532_v46 = vpop.f32.mrf.mxu1 }
 0x4e8   :  { %1949 = vmatmul.msk.f32.gmra.mxu2 %vm271_vm14, %v532_v46 }
 0x4e9   :  { %786 = vrot.lane.b32.xlu0 %v2456_v22, %s2343_s19 }
 0x4ef   :  { %v646_v47 = vpop.f32.mrf.mxu1 }
 0x4f0   :  { %v650_v48 = vmul.f32 0.35355338, %v646_v47 }
 0x4f2   :  { %v652_v49 = vadd.f32 %v650_v48, %v2474_v30 }
 0x4f4   :  { %v656_v50 = vsel %vm271_vm14, %v652_v49, -inf }
 0x4f5   :  { %657 = vmax.xlane.f32.xlu1 %v656_v50 }
 0x513   :  { %819 = vmax.xlane.f32.xlu0 %v818_v56 }
 0x527   :  { %840 = vrot.lane.b32.xlu0 %v2448_v21, %s2344_s20 }
 0x548   :  { %v667_v57 = vpop.xlane.xlu0 %666 }
 0x549   :  { %2069 = vrcp.f32 %v667_v57 }
 0x54f   :  { %v2070_v58 = vpop.eup %2069 }
 0x550   :  { %v673_v59 = vmul.f32 %v2070_v58, %v2068_v44 }
 0x552   :  { %1956 = vmatmul.msk.f32.vlgmr.msra.gmra.mxu3 %vm271_vm14, %v673_v59 }
 0x553   :  { %913 = vmatpush.msra.mxu3 %v266_v29 }
 0x55b   :  { %v787_v60 = vpop.permute.xlu0 %786 }
 0x55c   :  { %1963 = vmatmul.msk.f32.vlgmr.msrb.gmra.mxu3 %vm271_vm14, %v787_v60 }
 0x568   :  { %v658_v61 = vpop.xlane.xlu1 %657 }
 0x569   :  { %v660_v62 = vsub.f32 %v652_v49, %v658_v61  ;;  %v1054_v61 = vld [vmem:[#allocation12 + $0xa8] sm:$0xff] }
 0x56a   :  { %1077 = vmatpush.msra.mxu2 %v1054_v61 }
 0x56b   :  { %v663_v63 = vmul.f32 1.442695, %v660_v62  ;;  %v561_v37 = vpop.f32.mrf.mxu2  ;;  %v1053_v62 = vld [vmem:[#allocation12 + $0x78] sm:$0xff] }
 0x56c   :  { %1078 = vmatpush.msra.mxu2 %v1053_v62 }
 0x56d   :  { %2071 = vpow2.f32 %v663_v63  ;;  %v1017_v63 = vld [vmem:[#allocation12 + $0xa0] sm:$0xff] }
 0x573   :  { %v2072_v1 = vpop.eup %2071 }
 0x574   :  { %v668_v3 = vsel %vm271_vm14, %v2072_v1, 0.0 }
 0x575   :  { %669 = vadd.xlane.f32.xlu2 %v668_v3  ;;  %v1016_v3 = vld [vmem:[#allocation12 + $0x70] sm:$0xff] }
 0x586   :  { %v820_v4 = vpop.xlane.xlu0 %819 }
 0x587   :  { %v824_v5 = vsub.f32 %v816_v55, %v820_v4  ;;  %v1051_v4 = vld [vmem:[#allocation12 + $0x18] sm:$0xff] }
 0x589   :  { %v826_v21 = vmul.f32 1.442695, %v824_v5  ;;  %v130_v5 = vld [vmem:[#allocation7] sm:$0xff] }
 0x58b   :  { %2073 = vpow2.f32 %v826_v21  ;;  %v1014_v21 = vld [vmem:[#allocation12 + $0x10] sm:$0xff] }
 0x591   :  { %v2074_v6 = vpop.eup %2073 }
 0x592   :  { %v830_v7 = vsel %vm271_vm14, %v2074_v6, 0.0 }
 0x593   :  { %831 = vadd.xlane.f32.xlu1 %v830_v7 }
 0x5ac   :  { %701 = vrot.lane.b32.xlu1 %v2456_v22, %s2332_s3 }
 0x5b4   :  { %866 = vrot.lane.b32.xlu1 %v2456_v22, %s2344_s20  ;;  %v841_v22 = vpop.permute.xlu0 %840 }
 0x5d5   :  { %v698_v9 = vpop.f32.mrf.mxu3 }
 0x5d6   :  { %1958 = vmatmul.msk.f32.vlgmr.msrb.gmra.mxu2 %vm271_vm14, %v698_v9 }
 0x5df   :  { %v811_v11 = vpop.f32.mrf.mxu3 }
 0x5e0   :  { %v815_v12 = vmul.f32 0.35355338, %v811_v11 }
 0x5e2   :  { %v817_v13 = vadd.f32 %v815_v12, %v2474_v30 }
 0x5e4   :  { %v821_v14 = vsel %vm271_vm14, %v817_v13, -inf }
 0x5e5   :  { %822 = vmax.xlane.f32.xlu2 %v821_v14 }
 0x5e8   :  { %v670_v15 = vpop.xlane.xlu2 %669 }
 0x5e9   :  { %2075 = vrcp.f32 %v670_v15 }
 0x5ef   :  { %v2076_v17 = vpop.eup %2075 }
 0x5f0   :  { %v674_v19 = vmul.f32 %v2076_v17, %v2072_v1  ;;  %v1052_v1 = vld [vmem:[#allocation12 + $0x48] sm:$0xff] }
 0x5f1   :  { %1079 = vmatpush.msra.mxu2 %v1052_v1 }
 0x5f3   :  { %1080 = vmatpush.msra.mxu2 %v1051_v4 }
 0x606   :  { %v832_v16 = vpop.xlane.xlu1 %831 }
 0x607   :  { %2077 = vrcp.f32 %v832_v16 }
 0x60d   :  { %v2078_v18 = vpop.eup %2077 }
 0x60e   :  { %v838_v23 = vmul.f32 %v2078_v18, %v2074_v6 }
 0x61e   :  { %v702_v20 = vpop.permute.xlu1 %701 }
 0x61f   :  { %722 = vmatpush.msrb.mxu1 %v702_v20 }
 0x620   :  { %1957 = vmatmul.msk.f32.vlgmr.msrb.gmra.mxu1 %vm271_vm14, %v674_v19 }
 0x621   :  { %861 = vmatpush.msra.mxu1 %v841_v22 }
 0x623   :  { %1040 = vmatpush.msrb.mxu1 %v1017_v63 }
 0x625   :  { %1041 = vmatpush.msrb.mxu1 %v1016_v3 }
 0x626   :  { %v867_v24 = vpop.permute.xlu1 %866 }
 0x627   :  { %887 = vmatpush.msra.mxu0 %v867_v24 }
 0x628   :  { %1964 = vmatmul.msk.f32.vlgmr.msra.gmra.mxu1 %vm271_vm14, %v838_v23 }
 0x658   :  { %v823_v30 = vpop.xlane.xlu2 %822 }
 0x659   :  { %v825_v25 = vsub.f32 %v817_v13, %v823_v30  ;;  %v750_v38 = vpop.f32.mrf.mxu2 }
 0x65a   :  { %v756_v40 = vadd.f32 %v750_v38, %v588_v39 }
 0x65b   :  { %v828_v26 = vmul.f32 1.442695, %v825_v25  ;;  %v952_v25 = vstv %s2574_s21 }
 0x65d   :  { %2079 = vpow2.f32 %v828_v26 }
 0x663   :  { %v2080_v27 = vpop.eup %2079 }
 0x664   :  { %v833_v28 = vsel %vm271_vm14, %v2080_v27, 0.0 }
 0x665   :  { %834 = vadd.xlane.f32.xlu2 %v833_v28 }
 0x69d   :  { %v724_v31 = vpop.f32.mrf.mxu1 }
 0x69e   :  { %1959 = vmatmul.msk.f32.gmra.mxu2 %vm271_vm14, %v724_v31 }
 0x6a5   :  { %v863_v32 = vpop.f32.mrf.mxu1 }
 0x6a6   :  { %1966 = vmatmul.msk.f32.vlgmr.msra.gmra.mxu3 %vm271_vm14, %v863_v32  ;;  %1972 = vmatmul.msk.f32.vlgmr.msra.gmra.mxu2 %vm136_vm0, %v130_v5  ;;  %v1011_v32 = vstv %s2576_s22 }
 0x6d8   :  { %v835_v33 = vpop.xlane.xlu2 %834 }
 0x6d9   :  { %2081 = vrcp.f32 %v835_v33 }
 0x6df   :  { %v2082_v34 = vpop.eup %2081 }
 0x6e0   :  { %v839_v35 = vmul.f32 %v2082_v34, %v2080_v27 }
 0x6e2   :  { %1965 = vmatmul.msk.f32.vlgmr.msra.gmra.mxu0 %vm271_vm14, %v839_v35 }
 0x721   :  { %v753_v54 = vpop.f32.mrf.mxu2 }
 0x729   :  { %v915_v42 = vpop.f32.mrf.mxu3 }
 0x72a   :  { %v921_v43 = vadd.f32 %v915_v42, %v756_v40  ;;  %v2037_v40 = vld [vmem:[#allocation13 + $0x3] ss:$0 sm:$0xff] }
 0x72c   :  { %v926_v44 = vadd.f32 %v2036_v41, %v921_v43  ;;  %v2038_v43 = vld [vmem:[#allocation13 + $0x2] ss:$0 sm:$0xff] }
 0x72e   :  { %v2559_v45 = vadd.f32 %v926_v44, %v2414_v0  ;;  %v591_v0 = vadd.f32 %v2536_v52, %v561_v37  ;;  %v1015_v52 = vld [vmem:[#allocation12 + $0x40] sm:$0xff] }
 0x72f   :  { %1042 = vmatpush.msrb.mxu1 %v1015_v52 }
 0x730   :  { %v932_v46 = vsel %vm136_vm0, %v2559_v45, 0.0  ;;  %v757_v55 = vadd.f32 %v753_v54, %v591_v0 }
 0x731   :  { %933 = vadd.xlane.f32.xlu2 %v932_v46  ;;  %1043 = vmatpush.msrb.mxu1 %v1014_v21 }
 0x75f   :  { %v889_v47 = vpop.f32.mrf.mxu0 }
 0x760   :  { %1967 = vmatmul.msk.f32.gmra.mxu3 %vm271_vm14, %v889_v47  ;;  %v131_v47 = vld [vmem:[#allocation7 + $0x8] sm:$0xff] }
 0x761   :  { %1973 = vmatmul.msk.f32.gmra.mxu2 %vm136_vm0, %v131_v47 }
 0x7a4   :  { %v934_v48 = vpop.xlane.xlu2 %933 }
 0x7a5   :  { %v938_v49 = vmul.f32 %v934_v48, %v2422_v10 }
 0x7a7   :  { %v940_v50 = vsub.f32 %v2559_v45, %v938_v49 }
 0x7a9   :  { %v942_v51 = vmul.f32 %v940_v50, %v940_v50  ;;  %v953_v28 = vmul.f32 %v952_v25, %v940_v50 }
 0x7ab   :  { %v944_v53 = vsel %vm136_vm0, %v942_v51, 0.0 }
 0x7ac   :  { %945 = vadd.xlane.f32.xlu0 %v944_v53 }
 0x7e3   :  { %v918_v56 = vpop.f32.mrf.mxu3 }
 0x7e4   :  { %v922_v57 = vadd.f32 %v918_v56, %v757_v55 }
 0x7e6   :  { %v927_v58 = vadd.f32 %v2036_v41, %v922_v57  ;;  %v1082_v41 = vpop.f32.mrf.mxu2 }
 0x7e7   :  { %v2584_v42 = vadd.f32 %v2037_v40, %v1082_v41 }
 0x7e8   :  { %v2569_v59 = vadd.f32 %v927_v58, %v2418_v2 }
 0x7e9   :  { %1974 = vmatpush.xpose.msk.msrb.mxu0 %vm271_vm14, %v2584_v42 }
 0x7ea   :  { %v935_v60 = vsel %vm136_vm0, %v2569_v59, 0.0 }
 0x7eb   :  { %936 = vadd.xlane.f32.xlu1 %v935_v60 }
 0x81f   :  { %v946_v2 = vpop.xlane.xlu0 %945 }
 0x820   :  { %v950_v6 = vmul.f32 0.032258064, %v946_v2 }
 0x822   :  { %2083 = vrsqrt.f32 %v950_v6  ;;  %vm962_vm15 = vcmp.eq.f32.partialorder %v950_v6, inf  ;;  %v965_v15 = vand.u32 2147483648, %v950_v6  ;;  %vm964_vm1 = vcmp.eq.f32.partialorder %v950_v6, 0.0 }
 0x828   :  { %v2084_v7 = vpop.eup %2083 }
 0x829   :  { %v956_v8 = vmul.f32 %v2084_v7, %v950_v6 }
 0x82b   :  { %v957_v9 = vmul.f32 %v2084_v7, %v956_v8 }
 0x82d   :  { %v958_v11 = vmul.f32 0.5, %v957_v9 }
 0x82f   :  { %v959_v12 = vsub.f32 1.5, %v958_v11 }
 0x831   :  { %v960_v13 = vmul.f32 %v2084_v7, %v959_v12 }
 0x833   :  { %v961_v14 = vmul.f32 %v960_v13, %v950_v6 }
 0x835   :  { %v963_v16 = vsel %vm962_vm15, %v950_v6, %v961_v14  ;;  %v2600_v14 = vld [vmem:[#allocation10] sm:$0xff] }
 0x836   :  { %v966_v17 = vsel %vm964_vm1, %v965_v15, %v963_v16 }
 0x837   :  { %v979_v19 = vadd.f32 1e-06, %v966_v17 }
 0x839   :  { %2085 = vrcp.f32 %v979_v19  ;;  %v992_v23 = vand.u32 2147483648, %v979_v19  ;;  %v990_v30 = vand.u32 2147483647, %v979_v19  ;;  %vm986_vm3 = vweird.f32 %v979_v19 }
 0x83b   :  { %v993_v27 = vor.u32 1.1754944e-38, %v992_v23  ;;  %vm991_vm5 = vcmp.eq.f32.partialorder %v990_v30, 8.507059e+37 }
 0x83f   :  { %v2086_v20 = vpop.eup %2085 }
 0x840   :  { %v982_v22 = vmul.f32 %v2086_v20, %v979_v19  ;;  %vm987_vm2 = vweird.f32 %v2086_v20  ;;  %v1085_v19 = vpop.f32.mrf.mxu2 }
 0x841   :  { %vm988_vm4 = vmor %vm986_vm3, %vm987_vm2 }
 0x842   :  { %v983_v18 = vsub.f32 1.0, %v982_v22 }
 0x844   :  { %v984_v24 = vmul.f32 %v2086_v20, %v983_v18 }
 0x846   :  { %v985_v26 = vadd.f32 %v2086_v20, %v984_v24 }
 0x848   :  { %v989_v29 = vsel %vm988_vm4, %v2086_v20, %v985_v26  ;;  %v2604_v20 = vadd.f32 %v2037_v40, %v1085_v19 }
 0x849   :  { %v994_v31 = vsel %vm991_vm5, %v993_v27, %v989_v29 }
 0x84a   :  { %v995_v33 = vmul.f32 %v994_v31, %v953_v28  ;;  %1976 = vmatpush.xpose.msk.msra.mxu0 %vm271_vm14, %v2604_v20 }
 0x84c   :  { %v1012_v34 = vadd.f32 %v1011_v32, %v995_v33 }
 0x84e   :  { %1970 = vmatmul.msk.f32.vlgmr.msrb.gmra.mxu1 %vm136_vm0, %v1012_v34 }
 0x85e   :  { %v937_v35 = vpop.xlane.xlu1 %936 }
 0x85f   :  { %v939_v36 = vmul.f32 %v937_v35, %v2422_v10 }
 0x861   :  { %v941_v37 = vsub.f32 %v2569_v59, %v939_v36 }
 0x863   :  { %v943_v38 = vmul.f32 %v941_v37, %v941_v37  ;;  %v954_v6 = vmul.f32 %v952_v25, %v941_v37 }
 0x865   :  { %v947_v39 = vsel %vm136_vm0, %v943_v38, 0.0 }
 0x866   :  { %948 = vadd.xlane.f32.xlu2 %v947_v39 }
 0x87e   :  { %1225 = vrot.lane.b32.xlu2 %v2584_v42, %s2337_s2 }
 0x8cb   :  { %v1045_v44 = vpop.f32.mrf.mxu1 }
 0x8cc   :  { %v2590_v46 = vadd.f32 %v2038_v43, %v1045_v44 }
 0x8ce   :  { %1975 = vmatmul.msk.f32.vlgmr.msrb.gmra.mxu0 %vm271_vm14, %v2590_v46  ;;  %1223 = vrot.lane.b32.xlu2 %v2590_v46, %s2337_s2 }
 0x8d9   :  { %v949_v48 = vpop.xlane.xlu2 %948 }
 0x8da   :  { %v951_v49 = vmul.f32 0.032258064, %v949_v48 }
 0x8dc   :  { %2087 = vrsqrt.f32 %v951_v49  ;;  %vm974_vm6 = vcmp.eq.f32.partialorder %v951_v49, inf  ;;  %v977_v57 = vand.u32 2147483648, %v951_v49  ;;  %vm976_vm7 = vcmp.eq.f32.partialorder %v951_v49, 0.0 }
 0x8e1   :  { %v1226_v2 = vpop.permute.xlu2 %1225 }
 0x8e2   :  { %v2088_v50 = vpop.eup %2087  ;;  %1980 = vmatpush.xpose.msk.msrb.mxu2 %vm271_vm14, %v1226_v2 }
 0x8e3   :  { %v968_v51 = vmul.f32 %v2088_v50, %v951_v49 }
 0x8e5   :  { %v969_v53 = vmul.f32 %v2088_v50, %v968_v51 }
 0x8e7   :  { %v970_v54 = vmul.f32 0.5, %v969_v53 }
 0x8e9   :  { %v971_v0 = vsub.f32 1.5, %v970_v54 }
 0x8eb   :  { %v972_v55 = vmul.f32 %v2088_v50, %v971_v0 }
 0x8ed   :  { %v973_v56 = vmul.f32 %v972_v55, %v951_v49 }
 0x8ef   :  { %v975_v58 = vsel %vm974_vm6, %v951_v49, %v973_v56 }
 0x8f0   :  { %v978_v60 = vsel %vm976_vm7, %v977_v57, %v975_v58 }
 0x8f1   :  { %v980_v61 = vadd.f32 1e-06, %v978_v60 }
 0x8f3   :  { %2089 = vrcp.f32 %v980_v61  ;;  %v1007_v3 = vand.u32 2147483648, %v980_v61  ;;  %v1005_v4 = vand.u32 2147483647, %v980_v61  ;;  %vm1001_vm9 = vweird.f32 %v980_v61 }
 0x8f5   :  { %v1008_v21 = vor.u32 1.1754944e-38, %v1007_v3  ;;  %vm1006_vm11 = vcmp.eq.f32.partialorder %v1005_v4, 8.507059e+37 }
 0x8f9   :  { %v2090_v62 = vpop.eup %2089 }
 0x8fa   :  { %v997_v63 = vmul.f32 %v2090_v62, %v980_v61  ;;  %vm1002_vm8 = vweird.f32 %v2090_v62  ;;  %v1088_v61 = vld [vmem:[#allocation12 + $0x20] sm:$0xff] }
 0x8fb   :  { %vm1003_vm10 = vmor %vm1001_vm9, %vm1002_vm8 }
 0x8fc   :  { %v998_v1 = vsub.f32 1.0, %v997_v63 }
 0x8fe   :  { %v999_v52 = vmul.f32 %v2090_v62, %v998_v1 }
 0x900   :  { %v1000_v5 = vadd.f32 %v2090_v62, %v999_v52 }
 0x902   :  { %v1004_v7 = vsel %vm1003_vm10, %v2090_v62, %v1000_v5 }
 0x903   :  { %v1009_v8 = vsel %vm1006_vm11, %v1008_v21, %v1004_v7  ;;  %v1089_v7 = vld [vmem:[#allocation12 + $0x50] sm:$0xff] }
 0x904   :  { %v1010_v9 = vmul.f32 %v1009_v8, %v954_v6  ;;  %1378 = vmatpush.msra.mxu2 %v1089_v7 }
 0x906   :  { %v1013_v11 = vadd.f32 %v1011_v32, %v1010_v9 }
 0x908   :  { %1971 = vmatmul.msk.f32.gmra.mxu1 %vm136_vm0, %v1013_v11 }
 0x928   :  { %v1224_v12 = vpop.permute.xlu2 %1223 }
 0x929   :  { %1981 = vmatmul.msk.f32.vlgmr.msrb.gmra.mxu2 %vm271_vm14, %v1224_v12 }
 0x94b   :  { %v1116_v13 = vpop.f32.mrf.mxu0 }
 0x94c   :  { %v1145_v15 = vmul.f32 0.35355338, %v1116_v13 }
 0x94e   :  { %v1147_v16 = vadd.f32 %v1145_v15, %v2600_v14 }
 0x950   :  { %v1149_v17 = vsel %vm271_vm14, %v1147_v16, -inf }
 0x951   :  { %1150 = vmax.xlane.f32.xlu0 %v1149_v17 }
 0x965   :  { %1305 = vrot.lane.b32.xlu0 %v2584_v42, %s2335_s13 }
 0x985   :  { %v1048_v22 = vpop.f32.mrf.mxu1 }
 0x986   :  { %v2610_v18 = vadd.f32 %v2038_v43, %v1048_v22 }
 0x988   :  { %1251 = vrot.lane.b32.xlu0 %v2610_v18, %s2337_s2  ;;  %1977 = vmatmul.msk.f32.vlgmr.msra.gmra.mxu0 %vm271_vm14, %v2610_v18 }
 0x9ac   :  { %v1248_v23 = vpop.f32.mrf.mxu2 }
 0x9ad   :  { %v1279_v24 = vmul.f32 0.35355338, %v1248_v23 }
 0x9af   :  { %v1281_v30 = vadd.f32 %v1279_v24, %v2600_v14 }
 0x9b1   :  { %v1283_v25 = vsel %vm271_vm14, %v1281_v30, -inf }
 0x9b2   :  { %1284 = vmax.xlane.f32.xlu1 %v1283_v25 }
 0x9c4   :  { %v1151_v26 = vpop.xlane.xlu0 %1150 }
 0x9c5   :  { %v1155_v27 = vsub.f32 %v1147_v16, %v1151_v26 }
 0x9c7   :  { %v1157_v28 = vmul.f32 1.442695, %v1155_v27 }
 0x9c9   :  { %2091 = vpow2.f32 %v1157_v28 }
 0x9cb   :  { %1171 = vrot.lane.b32.xlu1 %v2584_v42, %s2336_s14 }
 0x9cf   :  { %v2092_v29 = vpop.eup %2091 }
 0x9d0   :  { %v1161_v31 = vsel %vm271_vm14, %v2092_v29, 0.0 }
 0x9d1   :  { %1162 = vadd.xlane.f32.xlu2 %v1161_v31 }
 0x9d3   :  { %1253 = vrot.lane.b32.xlu1 %v2604_v20, %s2337_s2 }
 0x9d7   :  { %v1306_v43 = vpop.permute.xlu0 %1305 }
 0x9db   :  { %1417 = vrot.lane.b32.xlu1 %v2584_v42, %s2339_s16 }
 0x9fa   :  { %v1252_v48 = vpop.permute.xlu0 %1251 }
 0xa05   :  { %v1142_v32 = vpop.f32.mrf.mxu0 }
 0xa06   :  { %v1146_v33 = vmul.f32 0.35355338, %v1142_v32 }
 0xa08   :  { %v1148_v34 = vadd.f32 %v1146_v33, %v2600_v14 }
 0xa0a   :  { %v1152_v35 = vsel %vm271_vm14, %v1148_v34, -inf }
 0xa0b   :  { %1153 = vmax.xlane.f32.xlu2 %v1152_v35 }
 0xa25   :  { %v1285_v36 = vpop.xlane.xlu1 %1284 }
 0xa26   :  { %v1289_v37 = vsub.f32 %v1281_v30, %v1285_v36 }
 0xa28   :  { %v1291_v38 = vmul.f32 1.442695, %v1289_v37 }
 0xa2a   :  { %2093 = vpow2.f32 %v1291_v38 }
 0xa30   :  { %v2094_v39 = vpop.eup %2093 }
 0xa31   :  { %v1295_v40 = vsel %vm271_vm14, %v2094_v39, 0.0 }
 0xa32   :  { %1296 = vadd.xlane.f32.xlu0 %v1295_v40 }
 0xa3d   :  { %v1172_v41 = vpop.permute.xlu1 %1171 }
 0xa3e   :  { %1192 = vmatpush.msrb.mxu3 %v1172_v41 }
 0xa40   :  { %1326 = vmatpush.msra.mxu3 %v1306_v43 }
 0xa44   :  { %v1163_v44 = vpop.xlane.xlu2 %1162 }
 0xa45   :  { %2095 = vrcp.f32 %v1163_v44  ;;  %v1254_v47 = vpop.permute.xlu1 %1253 }
 0xa46   :  { %1415 = vrot.lane.b32.xlu0 %v2590_v46, %s2339_s16  ;;  %1982 = vmatpush.xpose.msk.msrb.mxu0 %vm271_vm14, %v1254_v47 }
 0xa49   :  { %1983 = vmatmul.msk.f32.vlgmr.msrb.gmra.mxu0 %vm271_vm14, %v1252_v48 }
 0xa4a   :  { %1407 = vmatpush.msra.mxu0 %v1088_v61 }
 0xa4b   :  { %v2096_v49 = vpop.eup %2095 }
 0xa4c   :  { %v1169_v50 = vmul.f32 %v2096_v49, %v2092_v29 }
 0xa4d   :  { %v1418_v51 = vpop.permute.xlu1 %1417 }
 0xa4e   :  { %1197 = vrot.lane.b32.xlu0 %v2604_v20, %s2336_s14  ;;  %1978 = vmatmul.msk.f32.vlgmr.msrb.gmra.mxu3 %vm271_vm14, %v1169_v50 }
 0xa4f   :  { %1990 = vmatpush.xpose.msk.msrb.mxu3 %vm271_vm14, %v1418_v51  ;;  %v1090_v51 = vld [vmem:[#allocation12 + $0x80] sm:$0xff] }
 0xa50   :  { %1570 = vmatpush.msrb.mxu2 %v1090_v51 }
 0xa7e   :  { %v1154_v53 = vpop.xlane.xlu2 %1153 }
 0xa7f   :  { %v1156_v54 = vsub.f32 %v1148_v34, %v1154_v53 }
 0xa81   :  { %v1159_v0 = vmul.f32 1.442695, %v1156_v54 }
 0xa83   :  { %2097 = vpow2.f32 %v1159_v0 }
 0xa89   :  { %v2098_v55 = vpop.eup %2097 }
 0xa8a   :  { %v1164_v56 = vsel %vm271_vm14, %v2098_v55, 0.0 }
 0xa8b   :  { %1165 = vadd.xlane.f32.xlu1 %v1164_v56 }
 0xaa5   :  { %v1297_v57 = vpop.xlane.xlu0 %1296 }
 0xaa6   :  { %2099 = vrcp.f32 %v1297_v57 }
 0xaac   :  { %v2100_v58 = vpop.eup %2099 }
 0xaad   :  { %v1303_v60 = vmul.f32 %v2100_v58, %v2094_v39 }
 0xaaf   :  { %1984 = vmatmul.msk.f32.vlgmr.msra.gmra.mxu3 %vm271_vm14, %v1303_v60 }
 0xab8   :  { %v1416_v62 = vpop.permute.xlu0 %1415 }
 0xab9   :  { %1991 = vmatmul.msk.f32.vlgmr.msrb.gmra.mxu3 %vm271_vm14, %v1416_v62 }
 0xac0   :  { %v1198_v63 = vpop.permute.xlu0 %1197 }
 0xac1   :  { %1218 = vmatpush.msra.mxu1 %v1198_v63 }
 0xac6   :  { %v1276_v1 = vpop.f32.mrf.mxu0 }
 0xac7   :  { %v1280_v3 = vmul.f32 0.35355338, %v1276_v1 }
 0xac9   :  { %v1282_v52 = vadd.f32 %v1280_v3, %v2600_v14 }
 0xacb   :  { %v1286_v4 = vsel %vm271_vm14, %v1282_v52, -inf }
 0xacc   :  { %1287 = vmax.xlane.f32.xlu2 %v1286_v4 }
 0xad1   :  { %v1194_v5 = vpop.f32.mrf.mxu3 }
 0xad2   :  { %1988 = vmatmul.msk.f32.vlgmr.msra.gmra.mxu0 %vm271_vm14, %v1194_v5 }
 0xae4   :  { %1331 = vrot.lane.b32.xlu2 %v2604_v20, %s2335_s13 }
 0xaec   :  { %1445 = vrot.lane.b32.xlu2 %v2604_v20, %s2339_s16 }
 0xafe   :  { %v1166_v21 = vpop.xlane.xlu1 %1165 }
 0xaff   :  { %2101 = vrcp.f32 %v1166_v21 }
 0xb05   :  { %v2102_v2 = vpop.eup %2101 }
 0xb06   :  { %v1170_v6 = vmul.f32 %v2102_v2, %v2098_v55 }
 0xb08   :  { %1979 = vmatmul.msk.f32.vlgmr.msra.gmra.mxu1 %vm271_vm14, %v1170_v6 }
 0xb32   :  { %v1328_v8 = vpop.f32.mrf.mxu3 }
 0xb33   :  { %1986 = vmatmul.msk.f32.vlgmr.msra.gmra.mxu2 %vm271_vm14, %v1328_v8 }
 0xb3c   :  { %v1440_v9 = vpop.f32.mrf.mxu3 }
 0xb3d   :  { %v1471_v11 = vmul.f32 0.35355338, %v1440_v9 }
 0xb3f   :  { %v1288_v12 = vpop.xlane.xlu2 %1287  ;;  %v1473_v13 = vadd.f32 %v1471_v11, %v2600_v14 }
 0xb40   :  { %v1290_v15 = vsub.f32 %v1282_v52, %v1288_v12 }
 0xb41   :  { %v1475_v16 = vsel %vm271_vm14, %v1473_v13, -inf }
 0xb42   :  { %v1293_v17 = vmul.f32 1.442695, %v1290_v15  ;;  %1476 = vmax.xlane.f32.xlu0 %v1475_v16 }
 0xb44   :  { %2103 = vpow2.f32 %v1293_v17 }
 0xb47   :  { %v1332_v19 = vpop.permute.xlu2 %1331 }
 0xb48   :  { %1352 = vmatpush.msrb.mxu1 %v1332_v19 }
 0xb4a   :  { %v2104_v22 = vpop.eup %2103 }
 0xb4b   :  { %v1298_v23 = vsel %vm271_vm14, %v2104_v22, 0.0 }
 0xb4c   :  { %1299 = vadd.xlane.f32.xlu2 %v1298_v23 }
 0xb4f   :  { %v1446_v24 = vpop.permute.xlu2 %1445  ;;  %v2671_v40 = vpop.f32.mrf.mxu0 }
 0xb50   :  { %1992 = vmatpush.xpose.msk.msra.mxu1 %vm271_vm14, %v1446_v24 }
 0xb56   :  { %1582 = vrot.lane.b32.xlu0 %v2584_v42, %s2343_s19 }
 0xb5e   :  { %1608 = vrot.lane.b32.xlu0 %v2610_v18, %s2343_s19 }
 0xb64   :  { %1497 = vrot.lane.b32.xlu2 %v2584_v42, %s2341_s17 }
 0xb6c   :  { %1610 = vrot.lane.b32.xlu2 %v2604_v20, %s2343_s19 }
 0xb74   :  { %1580 = vrot.lane.b32.xlu2 %v2590_v46, %s2343_s19 }
 0xb85   :  { %v1220_v30 = vpop.f32.mrf.mxu1 }
 0xb86   :  { %1989 = vmatmul.msk.f32.gmra.mxu0 %vm271_vm14, %v1220_v30 }
 0xbb5   :  { %v1477_v25 = vpop.xlane.xlu0 %1476 }
 0xbb6   :  { %v1481_v26 = vsub.f32 %v1473_v13, %v1477_v25 }
 0xbb8   :  { %v1483_v27 = vmul.f32 1.442695, %v1481_v26 }
 0xbba   :  { %2105 = vpow2.f32 %v1483_v27 }
 0xbbf   :  { %v1300_v28 = vpop.xlane.xlu2 %1299 }
 0xbc0   :  { %v2106_v29 = vpop.eup %2105  ;;  %2107 = vrcp.f32 %v1300_v28 }
 0xbc1   :  { %v1487_v31 = vsel %vm271_vm14, %v2106_v29, 0.0 }
 0xbc2   :  { %1488 = vadd.xlane.f32.xlu1 %v1487_v31 }
 0xbc6   :  { %v2108_v32 = vpop.eup %2107 }
 0xbc7   :  { %v1304_v33 = vmul.f32 %v2108_v32, %v2104_v22  ;;  %v1498_v34 = vpop.permute.xlu2 %1497 }
 0xbc8   :  { %v1583_v35 = vpop.permute.xlu0 %1582  ;;  %1518 = vmatpush.msra.mxu3 %v1498_v34 }
 0xbc9   :  { %1985 = vmatmul.msk.f32.vlgmr.msrb.gmra.mxu1 %vm271_vm14, %v1304_v33  ;;  %1998 = vmatpush.xpose.msk.msrb.mxu0 %vm271_vm14, %v1583_v35  ;;  %v2039_v35 = vld [vmem:[#allocation13 + $0x4] ss:$0 sm:$0xff] }
 0xbcf   :  { %v1611_v46 = vpop.permute.xlu2 %1610 }
 0xbd0   :  { %2000 = vmatpush.xpose.msk.msrb.mxu3 %vm271_vm14, %v1611_v46  ;;  %v1609_v41 = vpop.permute.xlu0 %1608 }
 0xbd7   :  { %v1581_v36 = vpop.permute.xlu2 %1580 }
 0xbd8   :  { %1999 = vmatmul.msk.f32.vlgmr.msrb.gmra.mxu0 %vm271_vm14, %v1581_v36 }
 0xbdb   :  { %1443 = vrot.lane.b32.xlu1 %v2610_v18, %s2339_s16 }
 0xc03   :  { %v2675_v44 = vpop.f32.mrf.mxu0 }
 0xc35   :  { %v1489_v37 = vpop.xlane.xlu1 %1488 }
 0xc36   :  { %2109 = vrcp.f32 %v1489_v37 }
 0xc3c   :  { %v2110_v38 = vpop.eup %2109 }
 0xc3d   :  { %v1495_v39 = vmul.f32 %v2110_v38, %v2106_v29  ;;  %v1380_v29 = vpop.f32.mrf.mxu2 }
 0xc3e   :  { %v1410_v33 = vadd.f32 %v2671_v40, %v1380_v29 }
 0xc3f   :  { %1994 = vmatmul.msk.f32.vlgmr.msra.gmra.mxu3 %vm271_vm14, %v1495_v39 }
 0xc46   :  { %v1354_v43 = vpop.f32.mrf.mxu1 }
 0xc47   :  { %1987 = vmatmul.msk.f32.gmra.mxu2 %vm271_vm14, %v1354_v43  ;;  %2001 = vmatmul.msk.f32.vlgmr.msrb.gmra.mxu3 %vm271_vm14, %v1609_v41 }
 0xc4d   :  { %v1444_v47 = vpop.permute.xlu1 %1443 }
 0xc4e   :  { %1993 = vmatmul.msk.f32.vlgmr.msra.gmra.mxu1 %vm271_vm14, %v1444_v47 }
 0xc55   :  { %v1605_v18 = vpop.f32.mrf.mxu0 }
 0xc56   :  { %v1636_v48 = vmul.f32 0.35355338, %v1605_v18 }
 0xc58   :  { %v1638_v49 = vadd.f32 %v1636_v48, %v2600_v14 }
 0xc5a   :  { %v1640_v50 = vsel %vm271_vm14, %v1638_v49, -inf }
 0xc5b   :  { %1641 = vmax.xlane.f32.xlu1 %v1640_v50 }
 0xcc2   :  { %v1520_v53 = vpop.f32.mrf.mxu3 }
 0xcc3   :  { %1996 = vmatmul.msk.f32.vlgmr.msrb.gmra.mxu2 %vm271_vm14, %v1520_v53 }
 0xcca   :  { %v1633_v54 = vpop.f32.mrf.mxu3  ;;  %v1383_v31 = vpop.f32.mrf.mxu2 }
 0xccb   :  { %v1637_v0 = vmul.f32 0.35355338, %v1633_v54  ;;  %v1468_v55 = vpop.f32.mrf.mxu1  ;;  %v1413_v39 = vadd.f32 %v2675_v44, %v1383_v31  ;;  %v1774_v31 = vstv %s2726_s0 }
 0xccc   :  { %v1472_v56 = vmul.f32 0.35355338, %v1468_v55 }
 0xccd   :  { %v1639_v57 = vadd.f32 %v1637_v0, %v2600_v14 }
 0xcce   :  { %v1642_v58 = vpop.xlane.xlu1 %1641  ;;  %v1474_v60 = vadd.f32 %v1472_v56, %v2600_v14 }
 0xccf   :  { %v1646_v61 = vsub.f32 %v1638_v49, %v1642_v58  ;;  %v1643_v62 = vsel %vm271_vm14, %v1639_v57, -inf  ;;  %v1839_v58 = vld [vmem:[#allocation12 + $0xb8] sm:$0xff] }
 0xcd0   :  { %1644 = vmax.xlane.f32.xlu0 %v1643_v62  ;;  %v1478_v63 = vsel %vm271_vm14, %v1474_v60, -inf  ;;  %1893 = vmatpush.msra.mxu2 %v1839_v58  ;;  %v1837_v62 = vld [vmem:[#allocation12 + $0x58] sm:$0xff] }
 0xcd1   :  { %v1648_v1 = vmul.f32 1.442695, %v1646_v61  ;;  %1479 = vmax.xlane.f32.xlu2 %v1478_v63 }
 0xcd3   :  { %2111 = vpow2.f32 %v1648_v1  ;;  %v1836_v1 = vld [vmem:[#allocation12 + $0x28] sm:$0xff] }
 0xcd9   :  { %v2112_v3 = vpop.eup %2111 }
 0xcda   :  { %v1652_v52 = vsel %vm271_vm14, %v2112_v3, 0.0 }
 0xcdb   :  { %1653 = vadd.xlane.f32.xlu1 %v1652_v52 }
 0xce4   :  { %1523 = vrot.lane.b32.xlu0 %v2604_v20, %s2341_s17 }
 0xcf4   :  { %1662 = vrot.lane.b32.xlu1 %v2584_v42, %s2342_s18 }
 0xd43   :  { %v1645_v14 = vpop.xlane.xlu0 %1644 }
 0xd44   :  { %v1480_v4 = vpop.xlane.xlu2 %1479  ;;  %v1647_v21 = vsub.f32 %v1639_v57, %v1645_v14 }
 0xd45   :  { %v1482_v5 = vsub.f32 %v1474_v60, %v1480_v4  ;;  %v1838_v60 = vld [vmem:[#allocation12 + $0x88] sm:$0xff] }
 0xd46   :  { %v1650_v6 = vmul.f32 1.442695, %v1647_v21  ;;  %v1572_v32 = vpop.f32.mrf.mxu2  ;;  %1894 = vmatpush.msra.mxu2 %v1838_v60 }
 0xd47   :  { %v1485_v2 = vmul.f32 1.442695, %v1482_v5  ;;  %v1578_v34 = vadd.f32 %v1572_v32, %v1410_v33 }
 0xd48   :  { %1895 = vmatpush.msra.mxu2 %v1837_v62 }
 0xd49   :  { %2113 = vpow2.f32 %v1485_v2 }
 0xd4a   :  { %2115 = vpow2.f32 %v1650_v6  ;;  %1896 = vmatpush.msra.mxu2 %v1836_v1 }
 0xd4e   :  { %v1654_v13 = vpop.xlane.xlu1 %1653 }
 0xd4f   :  { %v2114_v7 = vpop.eup %2113 }
 0xd50   :  { %v1490_v8 = vsel %vm271_vm14, %v2114_v7, 0.0  ;;  %v2116_v9 = vpop.eup %2115 }
 0xd51   :  { %1491 = vadd.xlane.f32.xlu2 %v1490_v8  ;;  %v1655_v12 = vsel %vm271_vm14, %v2116_v9, 0.0 }
 0xd56   :  { %v1524_v11 = vpop.permute.xlu0 %1523 }
 0xd57   :  { %1544 = vmatpush.msrb.mxu1 %v1524_v11 }
 0xd59   :  { %1656 = vadd.xlane.f32.xlu2 %v1655_v12 }
 0xd66   :  { %v1663_v42 = vpop.permute.xlu1 %1662 }
 0xd67   :  { %1683 = vmatpush.msra.mxu1 %v1663_v42 }
 0xd71   :  { %1688 = vrot.lane.b32.xlu2 %v2604_v20, %s2342_s18  ;;  %v1091_v20 = vld [vmem:[#allocation12 + $0xb0] sm:$0xff] }
 0xd72   :  { %1735 = vmatpush.msra.mxu3 %v1091_v20 }
 0xdc4   :  { %v1492_v15 = vpop.xlane.xlu2 %1491 }
 0xdc5   :  { %2117 = vrcp.f32 %v1492_v15 }
 0xdc6   :  { %2119 = vrcp.f32 %v1654_v13 }
 0xdcb   :  { %v2118_v16 = vpop.eup %2117 }
 0xdcc   :  { %v1496_v17 = vmul.f32 %v2118_v16, %v2114_v7  ;;  %v1657_v19 = vpop.xlane.xlu2 %1656  ;;  %v2120_v22 = vpop.eup %2119 }
 0xdcd   :  { %2121 = vrcp.f32 %v1657_v19  ;;  %v1660_v24 = vmul.f32 %v2120_v22, %v2112_v3 }
 0xdce   :  { %1995 = vmatmul.msk.f32.vlgmr.msrb.gmra.mxu1 %vm271_vm14, %v1496_v17 }
 0xdcf   :  { %1862 = vmatpush.msrb.mxu1 %v1839_v58 }
 0xdd1   :  { %1863 = vmatpush.msrb.mxu1 %v1838_v60 }
 0xdd3   :  { %v2122_v23 = vpop.eup %2121  ;;  %1864 = vmatpush.msrb.mxu1 %v1837_v62 }
 0xdd4   :  { %v1661_v30 = vmul.f32 %v2122_v23, %v2116_v9  ;;  %v1689_v25 = vpop.permute.xlu2 %1688 }
 0xdd5   :  { %1709 = vmatpush.msra.mxu0 %v1689_v25  ;;  %1865 = vmatpush.msrb.mxu1 %v1836_v1 }
 0xdd6   :  { %2002 = vmatmul.msk.f32.vlgmr.msra.gmra.mxu1 %vm271_vm14, %v1660_v24  ;;  %2003 = vmatmul.msk.f32.vlgmr.msra.gmra.mxu0 %vm271_vm14, %v1661_v30 }
 0xe4b   :  { %v1546_v26 = vpop.f32.mrf.mxu1 }
 0xe4c   :  { %1997 = vmatmul.msk.f32.gmra.mxu2 %vm271_vm14, %v1546_v26 }
 0xe53   :  { %v1685_v27 = vpop.f32.mrf.mxu1  ;;  %v1711_v28 = vpop.f32.mrf.mxu0 }
 0xe54   :  { %2004 = vmatmul.msk.f32.vlgmr.msra.gmra.mxu3 %vm271_vm14, %v1685_v27 }
 0xe5c   :  { %2005 = vmatmul.msk.f32.gmra.mxu3 %vm271_vm14, %v1711_v28 }
 0xecf   :  { %v1575_v38 = vpop.f32.mrf.mxu2 }
 0xed0   :  { %v1579_v43 = vadd.f32 %v1575_v38, %v1413_v39  ;;  %v1833_v38 = vstv %s2728_s23 }
 0xed7   :  { %v1737_v46 = vpop.f32.mrf.mxu3 }
 0xed8   :  { %v1743_v36 = vadd.f32 %v1737_v46, %v1578_v34 }
 0xeda   :  { %v1748_v37 = vadd.f32 %v2039_v35, %v1743_v36 }
 0xedc   :  { %v2703_v41 = vadd.f32 %v1748_v37, %v2559_v45 }
 0xede   :  { %v1754_v47 = vsel %vm136_vm0, %v2703_v41, 0.0 }
 0xedf   :  { %1755 = vadd.xlane.f32.xlu0 %v1754_v47  ;;  %v1740_v18 = vpop.f32.mrf.mxu3 }
 0xee0   :  { %v1744_v48 = vadd.f32 %v1740_v18, %v1579_v43 }
 0xee2   :  { %v1749_v49 = vadd.f32 %v2039_v35, %v1744_v48 }
 0xee4   :  { %v2708_v40 = vadd.f32 %v1749_v49, %v2569_v59 }
 0xee6   :  { %v1757_v50 = vsel %vm136_vm0, %v2708_v40, 0.0 }
 0xee7   :  { %1758 = vadd.xlane.f32.xlu1 %v1757_v50 }
 0xf52   :  { %v1756_v51 = vpop.xlane.xlu0 %1755 }
 0xf53   :  { %v1760_v44 = vmul.f32 %v1756_v51, %v2422_v10 }
 0xf55   :  { %v2714_v45 = vsub.f32 %v2703_v41, %v1760_v44 }
 0xf57   :  { %v1764_v53 = vmul.f32 %v2714_v45, %v2714_v45  ;;  %v1775_v35 = vmul.f32 %v1774_v31, %v2714_v45 }
 0xf59   :  { %v1766_v54 = vsel %vm136_vm0, %v1764_v53, 0.0 }
 0xf5a   :  { %1767 = vadd.xlane.f32.xlu2 %v1766_v54  ;;  %v1759_v0 = vpop.xlane.xlu1 %1758 }
 0xf5b   :  { %v1761_v59 = vmul.f32 %v1759_v0, %v2422_v10 }
 0xf5d   :  { %v2721_v55 = vsub.f32 %v2708_v40, %v1761_v59  ;;  %v2040_v59 = vld [vmem:[#allocation13 + $0x5] ss:$0 sm:$0xff] }
 0xf5f   :  { %v1765_v56 = vmul.f32 %v2721_v55, %v2721_v55  ;;  %v1776_v44 = vmul.f32 %v1774_v31, %v2721_v55 }
 0xf61   :  { %v1769_v57 = vsel %vm136_vm0, %v1765_v56, 0.0 }
 0xf62   :  { %1770 = vadd.xlane.f32.xlu0 %v1769_v57 }
 0xfcd   :  { %v1768_v61 = vpop.xlane.xlu2 %1767 }
 0xfce   :  { %v1772_v63 = vmul.f32 0.032258064, %v1768_v61 }
 0xfd0   :  { %2123 = vrsqrt.f32 %v1772_v63  ;;  %vm1784_vm12 = vcmp.eq.f32.partialorder %v1772_v63, inf  ;;  %v1787_v11 = vand.u32 2147483648, %v1772_v63  ;;  %vm1786_vm13 = vcmp.eq.f32.partialorder %v1772_v63, 0.0 }
 0xfd5   :  { %v1771_v10 = vpop.xlane.xlu0 %1770 }
 0xfd6   :  { %v2124_v3 = vpop.eup %2123  ;;  %v1773_v52 = vmul.f32 0.032258064, %v1771_v10 }
 0xfd7   :  { %v1778_v14 = vmul.f32 %v2124_v3, %v1772_v63 }
 0xfd8   :  { %2125 = vrsqrt.f32 %v1773_v52  ;;  %vm1796_vm14 = vcmp.eq.f32.partialorder %v1773_v52, inf  ;;  %v1799_v22 = vand.u32 2147483648, %v1773_v52  ;;  %vm1798_vm15 = vcmp.eq.f32.partialorder %v1773_v52, 0.0 }
 0xfd9   :  { %v1779_v4 = vmul.f32 %v2124_v3, %v1778_v14 }
 0xfdb   :  { %v1780_v5 = vmul.f32 0.5, %v1779_v4 }
 0xfdd   :  { %v1781_v21 = vsub.f32 1.5, %v1780_v5 }
 0xfde   :  { %v2126_v2 = vpop.eup %2125 }
 0xfdf   :  { %v1782_v6 = vmul.f32 %v2124_v3, %v1781_v21  ;;  %v1790_v7 = vmul.f32 %v2126_v2, %v1773_v52 }
 0xfe1   :  { %v1783_v8 = vmul.f32 %v1782_v6, %v1772_v63  ;;  %v1791_v9 = vmul.f32 %v2126_v2, %v1790_v7 }
 0xfe3   :  { %v1785_v12 = vsel %vm1784_vm12, %v1772_v63, %v1783_v8  ;;  %v1792_v13 = vmul.f32 0.5, %v1791_v9 }
 0xfe4   :  { %v1788_v42 = vsel %vm1786_vm13, %v1787_v11, %v1785_v12 }
 0xfe5   :  { %v1801_v15 = vadd.f32 1e-06, %v1788_v42  ;;  %v1793_v16 = vsub.f32 1.5, %v1792_v13 }
 0xfe7   :  { %2127 = vrcp.f32 %v1801_v15  ;;  %v1794_v17 = vmul.f32 %v2126_v2, %v1793_v16  ;;  %v1814_v27 = vand.u32 2147483648, %v1801_v15  ;;  %v1812_v29 = vand.u32 2147483647, %v1801_v15 }
 0xfe8   :  { %vm1808_vm2 = vweird.f32 %v1801_v15 }
 0xfe9   :  { %v1795_v19 = vmul.f32 %v1794_v17, %v1773_v52  ;;  %v1815_v34 = vor.u32 1.1754944e-38, %v1814_v27  ;;  %vm1813_vm4 = vcmp.eq.f32.partialorder %v1812_v29, 8.507059e+37 }
 0xfeb   :  { %v1797_v23 = vsel %vm1796_vm14, %v1773_v52, %v1795_v19 }
 0xfec   :  { %v1800_v24 = vsel %vm1798_vm15, %v1799_v22, %v1797_v23 }
 0xfed   :  { %v2128_v30 = vpop.eup %2127  ;;  %v1802_v25 = vadd.f32 1e-06, %v1800_v24 }
 0xfee   :  { %v1804_v20 = vmul.f32 %v2128_v30, %v1801_v15  ;;  %vm1809_vm1 = vweird.f32 %v2128_v30 }
 0xfef   :  { %2129 = vrcp.f32 %v1802_v25  ;;  %vm1810_vm3 = vmor %vm1808_vm2, %vm1809_vm1  ;;  %v1829_v47 = vand.u32 2147483648, %v1802_v25  ;;  %v1827_v49 = vand.u32 2147483647, %v1802_v25  ;;  %vm1823_vm6 = vweird.f32 %v1802_v25 }
 0xff0   :  { %v1805_v26 = vsub.f32 1.0, %v1804_v20 }
 0xff1   :  { %v1830_v51 = vor.u32 1.1754944e-38, %v1829_v47  ;;  %vm1828_vm8 = vcmp.eq.f32.partialorder %v1827_v49, 8.507059e+37 }
 0xff2   :  { %v1806_v28 = vmul.f32 %v2128_v30, %v1805_v26 }
 0xff4   :  { %v1807_v32 = vadd.f32 %v2128_v30, %v1806_v28 }
 0xff5   :  { %v2130_v33 = vpop.eup %2129 }
 0xff6   :  { %v1811_v46 = vsel %vm1810_vm3, %v2128_v30, %v1807_v32  ;;  %v1819_v36 = vmul.f32 %v2130_v33, %v1802_v25  ;;  %vm1824_vm5 = vweird.f32 %v2130_v33 }
 0xff7   :  { %v1816_v37 = vsel %vm1813_vm4, %v1815_v34, %v1811_v46  ;;  %vm1825_vm7 = vmor %vm1823_vm6, %vm1824_vm5 }
 0xff8   :  { %v1817_v39 = vmul.f32 %v1816_v37, %v1775_v35  ;;  %v1820_v43 = vsub.f32 1.0, %v1819_v36 }
 0xffa   :  { %v1834_v18 = vadd.f32 %v1833_v38, %v1817_v39  ;;  %v1821_v48 = vmul.f32 %v2130_v33, %v1820_v43 }
 0xffc   :  { %2008 = vmatmul.msk.f32.vlgmr.msrb.gmra.mxu1 %vm136_vm0, %v1834_v18  ;;  %v1822_v50 = vadd.f32 %v2130_v33, %v1821_v48 }
 0xffe   :  { %v1826_v45 = vsel %vm1825_vm7, %v2130_v33, %v1822_v50 }
 0xfff   :  { %v1831_v53 = vsel %vm1828_vm8, %v1830_v51, %v1826_v45 }
0x1000   :  { %v1832_v54 = vmul.f32 %v1831_v53, %v1776_v44 }
0x1002   :  { %v1835_v0 = vadd.f32 %v1833_v38, %v1832_v54 }
0x1004   :  { %2009 = vmatmul.msk.f32.gmra.mxu1 %vm136_vm0, %v1835_v0 }
0x1079   :  { %v1867_v56 = vpop.f32.mrf.mxu1 }
0x107a   :  { %v1868_v57 = vadd.f32 %v2040_v59, %v1867_v56 }
0x107c   :  { %v1873_v58 = vmax.f32 %v1868_v57, 0.0 }
0x107e   :  { %2010 = vmatmul.msk.f32.vlgmr.msra.gmra.mxu2 %vm136_vm0, %v1873_v58 }
0x1081   :  { %v1870_v60 = vpop.f32.mrf.mxu1 }
0x1082   :  { %v1871_v61 = vadd.f32 %v2040_v59, %v1870_v60 }
0x1084   :  { %v1874_v62 = vmax.f32 %v1871_v61, 0.0 }
0x1086   :  { %2011 = vmatmul.msk.f32.gmra.mxu2 %vm136_vm0, %v1874_v62 }
0x1101   :  { %v1898_v63 = vpop.f32.mrf.mxu2 }
0x1102   :  { %v1904_v55 = vadd.f32 %v1898_v63, %v2703_v41 }
0x1104   :  { %v1906_v1 = vadd.f32 %v2040_v59, %v1904_v55 }
0x1106   :  { %1908 = vst.msk [vmem:[#allocation15] sm:$0xff] %vm136_vm0, %v1906_v1 }
0x1109   :  { %v1901_v10 = vpop.f32.mrf.mxu2 }
0x110a   :  { %v1905_v3 = vadd.f32 %v1901_v10, %v2708_v40 }
0x110c   :  { %v1907_v52 = vadd.f32 %v2040_v59, %v1905_v3 }
0x110e   :  { %1909 = vst.msk [vmem:[#allocation15 + $0x8] sm:$0xff] %vm136_vm0, %v1907_v52 }
0x110f   :  { %1922 = dma.vmem_to_hbm [thread:$0]  %s1915_s1, 256, %s1917_s27, [#allocation4], %s2324_s9, %s2324_s9, %s2325_s10  }
0x1110   :  { %2321 = dma.done.wait [#allocation4], 256  }
0x1111   :  { %2322 = vsyncadd [#allocation4], 4294967040 }
0x1112   :  { %1927 = vsyncpa [#allocation3], 1 }
0x1113   :  { %1928 = vsyncpa [#allocation8], 1 }
0x1114   :  { %1929 = vsyncpa [#allocation11], 1 }
0x1115   :  { %1930 = vsyncpa [#allocation14], 1 }
0x1116   :  { %1931 = vsyncpa [#allocation4], 1 }
0x1117   :  { %1932 = vsyncpa [#allocation5], 1 }

</bundles_post_ra>
